<compile_context>
chip_gen: v5e
topology: v5e:2x2
jax: 0.10.0
libtpu: 0.0.40
codegen_flags: <defaults>
</compile_context>

<pallas_src>
import functools

import jax
import jax.numpy as jnp
from jax.experimental import pallas as pl
from jax.experimental.pallas import tpu as pltpu


def _round_up(n, m):
    return ((n + m - 1) // m) * m


def mydnn_kernel(x_ref, w_in_ref, b_in_ref, w_hid_ref, b_hid_ref,
                 w_out_ref, b_out_ref, o_ref, *, num_layers):
    """One batch tile of the fused MLP.

    x_ref:     (TB, D_in)    f32   (cast to bf16 here, on the VMEM tile)
    w_in_ref:  (D_in, H)     bf16,  b_in_ref:  (1, H)    f32
    w_hid_ref: (L, H, H)     bf16,  b_hid_ref: (L, 1, H) f32
    w_out_ref: (H, D_out)    bf16,  b_out_ref: (1, D_out) f32
    o_ref:     (TB, D_out)   f32
    """
    mxu_dtype = w_in_ref.dtype

    # Input layer: f32 -> bf16 cast in VMEM, MXU matmul with f32 accumulation.
    x = x_ref[...].astype(mxu_dtype)
    h = jnp.dot(x, w_in_ref[...], preferred_element_type=jnp.float32)
    h = jnp.maximum(h + b_in_ref[...], 0.0)

    # Hidden layers (num_layers is a static Python int -> fully unrolled).
    for l in range(num_layers):
        h = jnp.dot(h.astype(mxu_dtype), w_hid_ref[l],
                    preferred_element_type=jnp.float32)
        h = jnp.maximum(h + b_hid_ref[l], 0.0)          # (1, H) broadcasts

    # Output layer: Linear, no activation.  Store only the real D_out columns.
    y = jnp.dot(h.astype(mxu_dtype), w_out_ref[...],
                preferred_element_type=jnp.float32)
    o_ref[...] = (y + b_out_ref[...]).astype(o_ref.dtype)


def mydnn_forward(x, params, num_layers, *, tile_b=4096, mxu_dtype=jnp.bfloat16):
    w_in, b_in, w_hid, b_hid, w_out, b_out = params
    B, D_in = x.shape
    H = w_in.shape[1]
    D_out = w_out.shape[1]
    L = num_layers

    # Batch tile: multiple of 8 sublanes, clamped to the (rounded-up) batch so
    # small batches run in a single grid step.  Partial trailing blocks are
    # handled by Pallas (masked writeback), so x is never padded in HBM.
    tile_b = max(8, min(_round_up(tile_b, 8), _round_up(B, 8)))
    grid = (pl.cdiv(B, tile_b),)

    # Weight / bias prep is a one-time, few-KiB cost (parameters, not the
    # activation stream): bf16 for the MXU operands, f32 for the VPU biases.
    w_in_p = w_in.astype(mxu_dtype)
    b_in_p = b_in.astype(jnp.float32)
    w_hid_p = w_hid.astype(mxu_dtype)
    b_hid_p = b_hid.astype(jnp.float32)
    w_out_p = w_out.astype(mxu_dtype)
    b_out_p = b_out.astype(jnp.float32)

    kernel = functools.partial(mydnn_kernel, num_layers=L)

    # Grid-invariant blocks: fetched once, VMEM-resident across all grid steps.
    resident = lambda shape: pl.BlockSpec(shape, lambda i, n=len(shape): (0,) * n)

    flops = 2 * B * (D_in * H + L * H * H + H * D_out)
    bytes_accessed = (
        B * D_in * 4                      # x (f32, read)
        + B * D_out * 4                   # out (f32, write)
        + sum(int(a.size) * a.dtype.itemsize
              for a in (w_in_p, b_in_p, w_hid_p, b_hid_p, w_out_p, b_out_p)))

    out = pl.pallas_call(
        kernel,
        out_shape=jax.ShapeDtypeStruct((B, D_out), jnp.float32),
        grid_spec=pl.GridSpec(
            grid=grid,
            in_specs=[
                pl.BlockSpec((tile_b, D_in), lambda i: (i, 0)),  # x: batch-tiled
                resident(w_in_p.shape), resident(b_in_p.shape),
                resident(w_hid_p.shape), resident(b_hid_p.shape),
                resident(w_out_p.shape), resident(b_out_p.shape),
            ],
            out_specs=pl.BlockSpec((tile_b, D_out), lambda i: (i, 0)),
        ),
        compiler_params=pltpu.CompilerParams(
            dimension_semantics=("parallel",)),   # v7x: both TCs split the batch
        cost_estimate=pl.CostEstimate(
            flops=flops, transcendentals=0, bytes_accessed=bytes_accessed),
    )(x, w_in_p, b_in_p, w_hid_p, b_hid_p, w_out_p, b_out_p)

    return out


def lecun_init(key, fan_in, shape):
    # LeCun normal initialization: std = 1/sqrt(fan_in), deterministic via key.
    return (jax.random.normal(key, shape, dtype=jnp.float32)
            / jnp.sqrt(jnp.float32(fan_in)))


def make_params(key, dim_in, dim_hidden, dim_out, num_layers):
    keys = jax.random.split(key, 2 * (num_layers + 2))
    ki = iter(keys)

    w_in = lecun_init(next(ki), dim_in, (dim_in, dim_hidden))
    b_in = lecun_init(next(ki), dim_in, (1, dim_hidden))

    w_hid = jnp.stack([lecun_init(next(ki), dim_hidden, (dim_hidden, dim_hidden))
                       for _ in range(num_layers)], axis=0)          # (L, H, H)
    b_hid = jnp.stack([lecun_init(next(ki), dim_hidden, (1, dim_hidden))
                       for _ in range(num_layers)], axis=0)          # (L, 1, H)

    w_out = lecun_init(next(ki), dim_hidden, (dim_hidden, dim_out))
    b_out = lecun_init(next(ki), dim_hidden, (1, dim_out))
    return (w_in, b_in, w_hid, b_hid, w_out, b_out)


def reference_forward(x, params, num_layers, mxu_dtype=jnp.float32):
    """Pure-JAX reference. mxu_dtype=f32 reproduces the PyTorch module exactly;
    mxu_dtype=bf16 emulates the kernel's bf16-in / f32-accumulate MXU path."""
    w_in, b_in, w_hid, b_hid, w_out, b_out = params
    c = lambda a: a.astype(mxu_dtype)
    h = jnp.dot(c(x), c(w_in), preferred_element_type=jnp.float32)
    h = jnp.maximum(h + b_in, 0.0)
    for l in range(num_layers):
        h = jnp.dot(c(h), c(w_hid[l]), preferred_element_type=jnp.float32)
        h = jnp.maximum(h + b_hid[l], 0.0)
    y = jnp.dot(c(h), c(w_out), preferred_element_type=jnp.float32)
    return y + b_out


if __name__ == "__main__":
    # Shapes consistent with the module: a stream of small feature frames.
    batch = 512
    dim_in = 32
    dim_hidden = 32
    dim_out = 16
    num_layers = 2

    key = jax.random.PRNGKey(0)
    k_params, k_x = jax.random.split(key)
    params = make_params(k_params, dim_in, dim_hidden, dim_out, num_layers)
    x = jax.random.normal(k_x, (batch, dim_in), dtype=jnp.float32)

    out = mydnn_forward(x, params, num_layers)
    out = jax.block_until_ready(out)

    assert out.shape == (batch, dim_out)

    # Tight check against a reference that uses the same bf16 MXU precision.
    ref_mxu = reference_forward(x, params, num_layers, mxu_dtype=jnp.bfloat16)
    assert jnp.allclose(out, ref_mxu, atol=1e-3, rtol=1e-3), (
        "mismatch vs bf16-emulating reference: max abs diff "
        f"{float(jnp.max(jnp.abs(out - ref_mxu))):.3e}")

    # Loose sanity check against the exact f32 module math.
    # TODO(synk): if bit parity with the f32 PyTorch module is required, feed
    # f32 operands to the dots (slower on MXU) instead of bf16.
    ref_f32 = reference_forward(x, params, num_layers, mxu_dtype=jnp.float32)
    assert jnp.allclose(out, ref_f32, atol=1e-1, rtol=1e-1), (
        "mismatch vs f32 reference: max abs diff "
        f"{float(jnp.max(jnp.abs(out - ref_f32))):.3e}")

    print("KERNEL_OK")
</pallas_src>

<mosaic_0001>
module attributes {stable_mosaic.version = 11 : i64} {
  func.func @mydnn_kernel(%arg0: i32, %arg1: memref<512x32xf32, #tpu.memory_space<vmem>>, %arg2: memref<32x32xbf16, #tpu.memory_space<vmem>>, %arg3: memref<1x32xf32, #tpu.memory_space<vmem>>, %arg4: memref<2x32x32xbf16, #tpu.memory_space<vmem>>, %arg5: memref<2x1x32xf32, #tpu.memory_space<vmem>>, %arg6: memref<32x16xbf16, #tpu.memory_space<vmem>>, %arg7: memref<1x16xf32, #tpu.memory_space<vmem>>, %arg8: memref<512x16xf32, #tpu.memory_space<vmem>>) attributes {dimension_semantics = [#tpu.dimension_semantics<parallel>], iteration_bounds = array<i64: 1>, scalar_prefetch = 0 : i64, scratch_operands = 0 : i64, tpu.core_type = #tpu.core_type<tc>, window_params = [{transform_indices = @transform_0, window_bounds = array<i64: 512, 32>}, {pipeline_mode = #tpu.pipeline_mode<synchronous>, transform_indices = @transform_1, window_bounds = array<i64: 32, 32>}, {pipeline_mode = #tpu.pipeline_mode<synchronous>, transform_indices = @transform_2, window_bounds = array<i64: 1, 32>}, {pipeline_mode = #tpu.pipeline_mode<synchronous>, transform_indices = @transform_3, window_bounds = array<i64: 2, 32, 32>}, {pipeline_mode = #tpu.pipeline_mode<synchronous>, transform_indices = @transform_4, window_bounds = array<i64: 2, 1, 32>}, {pipeline_mode = #tpu.pipeline_mode<synchronous>, transform_indices = @transform_5, window_bounds = array<i64: 32, 16>}, {pipeline_mode = #tpu.pipeline_mode<synchronous>, transform_indices = @transform_6, window_bounds = array<i64: 1, 16>}, {transform_indices = @transform_7, window_bounds = array<i64: 512, 16>}]} {
    %c0 = arith.constant 0 : index
    %c0_0 = arith.constant 0 : index
    %0 = vector.load %arg1[%c0, %c0_0] : memref<512x32xf32, #tpu.memory_space<vmem>>, vector<512x32xf32>
    %1 = arith.truncf %0 : vector<512x32xf32> to vector<512x32xbf16>
    %c0_1 = arith.constant 0 : index
    %c0_2 = arith.constant 0 : index
    %2 = vector.load %arg2[%c0_1, %c0_2] : memref<32x32xbf16, #tpu.memory_space<vmem>>, vector<32x32xbf16>
    %cst = arith.constant dense<0.000000e+00> : vector<512x32xf32>
    %3 = tpu.matmul %1, %2, %cst {dimension_numbers = #tpu.dot_dimension_numbers<[1], [0], [0], [1], [0, 0, 1, 1], [], []>} : vector<512x32xbf16>, vector<32x32xbf16>, vector<512x32xf32> -> vector<512x32xf32>
    %c0_3 = arith.constant 0 : index
    %c0_4 = arith.constant 0 : index
    %4 = vector.load %arg3[%c0_3, %c0_4] : memref<1x32xf32, #tpu.memory_space<vmem>>, vector<1x32xf32>
    %5 = vector.broadcast %4 : vector<1x32xf32> to vector<512x32xf32>
    %6 = arith.addf %3, %5 : vector<512x32xf32>
    %cst_5 = arith.constant 0.000000e+00 : f32
    %7 = vector.broadcast %cst_5 : f32 to vector<512x32xf32>
    %8 = arith.maximumf %6, %7 : vector<512x32xf32>
    %9 = arith.truncf %8 : vector<512x32xf32> to vector<512x32xbf16>
    %c0_6 = arith.constant 0 : index
    %c0_7 = arith.constant 0 : index
    %c0_8 = arith.constant 0 : index
    %10 = vector.load %arg4[%c0_6, %c0_7, %c0_8] : memref<2x32x32xbf16, #tpu.memory_space<vmem>>, vector<1x32x32xbf16>
    %11 = vector.shape_cast %10 : vector<1x32x32xbf16> to vector<32x32xbf16>
    %cst_9 = arith.constant dense<0.000000e+00> : vector<512x32xf32>
    %12 = tpu.matmul %9, %11, %cst_9 {dimension_numbers = #tpu.dot_dimension_numbers<[1], [0], [0], [1], [0, 0, 1, 1], [], []>} : vector<512x32xbf16>, vector<32x32xbf16>, vector<512x32xf32> -> vector<512x32xf32>
    %c0_10 = arith.constant 0 : index
    %c0_11 = arith.constant 0 : index
    %c0_12 = arith.constant 0 : index
    %13 = vector.load %arg5[%c0_10, %c0_11, %c0_12] : memref<2x1x32xf32, #tpu.memory_space<vmem>>, vector<1x1x32xf32>
    %14 = vector.shape_cast %13 : vector<1x1x32xf32> to vector<1x32xf32>
    %15 = vector.broadcast %14 : vector<1x32xf32> to vector<512x32xf32>
    %16 = arith.addf %12, %15 : vector<512x32xf32>
    %cst_13 = arith.constant 0.000000e+00 : f32
    %17 = vector.broadcast %cst_13 : f32 to vector<512x32xf32>
    %18 = arith.maximumf %16, %17 : vector<512x32xf32>
    %19 = arith.truncf %18 : vector<512x32xf32> to vector<512x32xbf16>
    %c1 = arith.constant 1 : index
    %c0_14 = arith.constant 0 : index
    %c0_15 = arith.constant 0 : index
    %20 = vector.load %arg4[%c1, %c0_14, %c0_15] : memref<2x32x32xbf16, #tpu.memory_space<vmem>>, vector<1x32x32xbf16>
    %21 = vector.shape_cast %20 : vector<1x32x32xbf16> to vector<32x32xbf16>
    %cst_16 = arith.constant dense<0.000000e+00> : vector<512x32xf32>
    %22 = tpu.matmul %19, %21, %cst_16 {dimension_numbers = #tpu.dot_dimension_numbers<[1], [0], [0], [1], [0, 0, 1, 1], [], []>} : vector<512x32xbf16>, vector<32x32xbf16>, vector<512x32xf32> -> vector<512x32xf32>
    %c1_17 = arith.constant 1 : index
    %c0_18 = arith.constant 0 : index
    %c0_19 = arith.constant 0 : index
    %23 = vector.load %arg5[%c1_17, %c0_18, %c0_19] : memref<2x1x32xf32, #tpu.memory_space<vmem>>, vector<1x1x32xf32>
    %24 = vector.shape_cast %23 : vector<1x1x32xf32> to vector<1x32xf32>
    %25 = vector.broadcast %24 : vector<1x32xf32> to vector<512x32xf32>
    %26 = arith.addf %22, %25 : vector<512x32xf32>
    %cst_20 = arith.constant 0.000000e+00 : f32
    %27 = vector.broadcast %cst_20 : f32 to vector<512x32xf32>
    %28 = arith.maximumf %26, %27 : vector<512x32xf32>
    %29 = arith.truncf %28 : vector<512x32xf32> to vector<512x32xbf16>
    %c0_21 = arith.constant 0 : index
    %c0_22 = arith.constant 0 : index
    %30 = vector.load %arg6[%c0_21, %c0_22] : memref<32x16xbf16, #tpu.memory_space<vmem>>, vector<32x16xbf16>
    %cst_23 = arith.constant dense<0.000000e+00> : vector<512x16xf32>
    %31 = tpu.matmul %29, %30, %cst_23 {dimension_numbers = #tpu.dot_dimension_numbers<[1], [0], [0], [1], [0, 0, 1, 1], [], []>} : vector<512x32xbf16>, vector<32x16xbf16>, vector<512x16xf32> -> vector<512x16xf32>
    %c0_24 = arith.constant 0 : index
    %c0_25 = arith.constant 0 : index
    %32 = vector.load %arg7[%c0_24, %c0_25] : memref<1x16xf32, #tpu.memory_space<vmem>>, vector<1x16xf32>
    %33 = vector.broadcast %32 : vector<1x16xf32> to vector<512x16xf32>
    %34 = arith.addf %31, %33 : vector<512x16xf32>
    %c0_26 = arith.constant 0 : index
    %c0_27 = arith.constant 0 : index
    %35 = vector.load %arg8[%c0_26, %c0_27] : memref<512x16xf32, #tpu.memory_space<vmem>>, vector<512x16xf32>
    tpu.vector_store %arg8[%c0_26, %c0_27], %34 {strides = array<i32>} : memref<512x16xf32, #tpu.memory_space<vmem>>, vector<512x16xf32>,
    return
  }
  func.func @transform_0(%arg0: i32) -> (i32, i32) {
    %c0_i32 = arith.constant 0 : i32
    %c0_i32_0 = arith.constant 0 : i32
    return %arg0, %c0_i32 : i32, i32
  }
  func.func @transform_1(%arg0: i32) -> (i32, i32) {
    %c0_i32 = arith.constant 0 : i32
    %c0_i32_0 = arith.constant 0 : i32
    %c0_i32_1 = arith.constant 0 : i32
    return %c0_i32, %c0_i32_0 : i32, i32
  }
  func.func @transform_2(%arg0: i32) -> (i32, i32) {
    %c0_i32 = arith.constant 0 : i32
    %c0_i32_0 = arith.constant 0 : i32
    %c0_i32_1 = arith.constant 0 : i32
    return %c0_i32, %c0_i32_0 : i32, i32
  }
  func.func @transform_3(%arg0: i32) -> (i32, i32, i32) {
    %c0_i32 = arith.constant 0 : i32
    %c0_i32_0 = arith.constant 0 : i32
    %c0_i32_1 = arith.constant 0 : i32
    %c0_i32_2 = arith.constant 0 : i32
    return %c0_i32, %c0_i32_0, %c0_i32_1 : i32, i32, i32
  }
  func.func @transform_4(%arg0: i32) -> (i32, i32, i32) {
    %c0_i32 = arith.constant 0 : i32
    %c0_i32_0 = arith.constant 0 : i32
    %c0_i32_1 = arith.constant 0 : i32
    %c0_i32_2 = arith.constant 0 : i32
    return %c0_i32, %c0_i32_0, %c0_i32_1 : i32, i32, i32
  }
  func.func @transform_5(%arg0: i32) -> (i32, i32) {
    %c0_i32 = arith.constant 0 : i32
    %c0_i32_0 = arith.constant 0 : i32
    %c0_i32_1 = arith.constant 0 : i32
    return %c0_i32, %c0_i32_0 : i32, i32
  }
  func.func @transform_6(%arg0: i32) -> (i32, i32) {
    %c0_i32 = arith.constant 0 : i32
    %c0_i32_0 = arith.constant 0 : i32
    %c0_i32_1 = arith.constant 0 : i32
    return %c0_i32, %c0_i32_0 : i32, i32
  }
  func.func @transform_7(%arg0: i32) -> (i32, i32) {
    %c0_i32 = arith.constant 0 : i32
    %c0_i32_0 = arith.constant 0 : i32
    return %arg0, %c0_i32 : i32, i32
  }
}

</mosaic_0001>

<bundles_post_ra>
// kernel: tpu_custom_call.1
= control target key start
LH: loop header
LB: loop body
LE: loop exit
PB: predicated region body
PF: predicated region fallthrough
CT: control target
= control target key end

     0   :  { %vm143_vm0 = vcmask 261120   ;;  %vm1554_vm1 = vcmask 130048   ;;  %s2732_s1 = inlined_call_operand.vmem [shape: bf16[32,32], index: 1, kind: input, shape index: {}]   ;;  %s2733_s0 = inlined_call_operand.vmem [shape: f32[512,32], index: 0, kind: input, shape index: {}]   ;;  %s2734_s2 = inlined_call_operand.vmem [shape: f32[1,32], index: 2, kind: input, shape index: {}]   ;;  %s2735_s3 = inlined_call_operand.vmem [shape: bf16[2,32,32], index: 3, kind: input, shape index: {}]   ;;  %s2736_s4 = inlined_call_operand.vmem [shape: f32[2,1,32], index: 4, kind: input, shape index: {}]   ;;  %s2737_s5 = inlined_call_operand.vmem [shape: bf16[32,16], index: 5, kind: input, shape index: {}]   ;;  %s2738_s6 = inlined_call_operand.vmem [shape: f32[1,16], index: 6, kind: input, shape index: {}]   ;;  %s2739_s7 = inlined_call_operand.vmem [shape: f32[512,16], index: 7, kind: output, shape index: {}]  }
   0x1   :  { %v1789_v0 = vld [vmem:[%s2732_s1 + $0x8] sm:$0xff]  ;;  %v1788_v1 = vld [vmem:[%s2732_s1] sm:$0xff]  ;;  %v29_v5 = vld [vmem:[%s2733_s0 + $0x10] sm:$0xff] }
   0x2   :  { %246 = vmatpush.bf16.msra.mxu0 %v1789_v0  ;;  %v27_v2 = vld [vmem:[%s2733_s0] sm:$0xff]  ;;  %v28_v3 = vld [vmem:[%s2733_s0 + $0x8] sm:$0xff]  ;;  %v30_v6 = vld [vmem:[%s2733_s0 + $0x18] sm:$0xff] }
   0x3   :  { %v91_v4 = vpack.c.bf16 %v28_v3, %v27_v2  ;;  %v92_v7 = vpack.c.bf16 %v30_v6, %v29_v5  ;;  %v31_v8 = vld [vmem:[%s2733_s0 + $0x20] sm:$0xff]  ;;  %v32_v9 = vld [vmem:[%s2733_s0 + $0x28] sm:$0xff]  ;;  %v33_v11 = vld [vmem:[%s2733_s0 + $0x30] sm:$0xff] }
   0x4   :  { %v93_v10 = vpack.c.bf16 %v32_v9, %v31_v8  ;;  %v34_v12 = vld [vmem:[%s2733_s0 + $0x38] sm:$0xff]  ;;  %v35_v14 = vld [vmem:[%s2733_s0 + $0x40] sm:$0xff]  ;;  %v36_v15 = vld [vmem:[%s2733_s0 + $0x48] sm:$0xff] }
   0x5   :  { %v94_v13 = vpack.c.bf16 %v34_v12, %v33_v11  ;;  %v95_v16 = vpack.c.bf16 %v36_v15, %v35_v14  ;;  %v37_v17 = vld [vmem:[%s2733_s0 + $0x50] sm:$0xff]  ;;  %v38_v18 = vld [vmem:[%s2733_s0 + $0x58] sm:$0xff]  ;;  %v39_v20 = vld [vmem:[%s2733_s0 + $0x60] sm:$0xff] }
   0x6   :  { %247 = vmatpush.bf16.msra.mxu0 %v1788_v1  ;;  %v96_v19 = vpack.c.bf16 %v38_v18, %v37_v17  ;;  %v40_v21 = vld [vmem:[%s2733_s0 + $0x68] sm:$0xff]  ;;  %v1790_v24 = vld [vmem:[%s2735_s3] sm:$0xff]  ;;  %v41_v25 = vld [vmem:[%s2733_s0 + $0x70] sm:$0xff] }
   0x7   :  { %v97_v22 = vpack.c.bf16 %v40_v21, %v39_v20  ;;  %v1791_v23 = vld [vmem:[%s2735_s3 + $0x8] sm:$0xff]  ;;  %v42_v26 = vld [vmem:[%s2733_s0 + $0x78] sm:$0xff]  ;;  %v43_v28 = vld [vmem:[%s2733_s0 + $0x80] sm:$0xff] }
   0x8   :  { %627 = vmatpush.bf16.msra.mxu1 %v1791_v23  ;;  %v98_v27 = vpack.c.bf16 %v42_v26, %v41_v25  ;;  %v44_v29 = vld [vmem:[%s2733_s0 + $0x88] sm:$0xff]  ;;  %v1921_v32 = vld [vmem:[%s2734_s2] ss:$0 sm:$0xff]  ;;  %v45_v38 = vld [vmem:[%s2733_s0 + $0x90] sm:$0xff] }
   0x9   :  { %1631 = vmatmul.msk.bf16.vlgmr.msra.gmra.mxu0 %vm143_vm0, %v91_v4  ;;  %v99_v30 = vpack.c.bf16 %v44_v29, %v43_v28  ;;  %v46_v39 = vld [vmem:[%s2733_s0 + $0x98] sm:$0xff]  ;;  %v47_v48 = vld [vmem:[%s2733_s0 + $0xa0] sm:$0xff]  ;;  %v48_v49 = vld [vmem:[%s2733_s0 + $0xa8] sm:$0xff] }
   0xa   :  { %v100_v41 = vpack.c.bf16 %v46_v39, %v45_v38  ;;  %v101_v51 = vpack.c.bf16 %v48_v49, %v47_v48  ;;  %v49_v58 = vld [vmem:[%s2733_s0 + $0xb0] sm:$0xff]  ;;  %v50_v59 = vld [vmem:[%s2733_s0 + $0xb8] sm:$0xff]  ;;  %v51_v4 = vld [vmem:[%s2733_s0 + $0xc0] sm:$0xff] }
   0xb   :  { %v102_v61 = vpack.c.bf16 %v50_v59, %v49_v58  ;;  %v52_v5 = vld [vmem:[%s2733_s0 + $0xc8] sm:$0xff]  ;;  %v53_v14 = vld [vmem:[%s2733_s0 + $0xd0] sm:$0xff]  ;;  %v54_v15 = vld [vmem:[%s2733_s0 + $0xd8] sm:$0xff] }
   0xc   :  { %628 = vmatpush.bf16.msra.mxu1 %v1790_v24  ;;  %v104_v17 = vpack.c.bf16 %v54_v15, %v53_v14  ;;  %v55_v24 = vld [vmem:[%s2733_s0 + $0xe0] sm:$0xff]  ;;  %v56_v25 = vld [vmem:[%s2733_s0 + $0xe8] sm:$0xff]  ;;  %v61_v58 = vld [vmem:[%s2733_s0 + $0x110] sm:$0xff] }
   0xd   :  { %v60_v48 = vld [vmem:[%s2733_s0 + $0x108] sm:$0xff]  ;;  %v62_v59 = vld [vmem:[%s2733_s0 + $0x118] sm:$0xff] }
  0x19   :  { %1632 = vmatmul.msk.bf16.gmra.mxu0 %vm143_vm0, %v92_v7  ;;  %v103_v7 = vpack.c.bf16 %v52_v5, %v51_v4 }
  0x29   :  { %1633 = vmatmul.msk.bf16.gmra.mxu0 %vm143_vm0, %v93_v10 }
  0x39   :  { %1634 = vmatmul.msk.bf16.gmra.mxu0 %vm143_vm0, %v94_v13 }
  0x49   :  { %1635 = vmatmul.msk.bf16.gmra.mxu0 %vm143_vm0, %v95_v16 }
  0x59   :  { %1636 = vmatmul.msk.bf16.gmra.mxu0 %vm143_vm0, %v96_v19 }
  0x69   :  { %1637 = vmatmul.msk.bf16.gmra.mxu0 %vm143_vm0, %v97_v22 }
  0x79   :  { %1638 = vmatmul.msk.bf16.gmra.mxu0 %vm143_vm0, %v98_v27  ;;  %v105_v27 = vpack.c.bf16 %v56_v25, %v55_v24 }
  0x86   :  { %v249_v31 = vpop.f32.mrf.mxu0 }
  0x87   :  { %v250_v33 = vadd.f32 %v1921_v32, %v249_v31 }
  0x89   :  { %1639 = vmatmul.msk.bf16.gmra.mxu0 %vm143_vm0, %v99_v30  ;;  %v409_v36 = vmax.f32 %v250_v33, 0.0 }
  0x8e   :  { %v251_v34 = vpop.f32.mrf.mxu0 }
  0x8f   :  { %v252_v35 = vadd.f32 %v1921_v32, %v251_v34 }
  0x91   :  { %v410_v37 = vmax.f32 %v252_v35, 0.0  ;;  %v57_v35 = vld [vmem:[%s2733_s0 + $0xf0] sm:$0xff] }
  0x93   :  { %v473_v40 = vpack.c.bf16 %v410_v37, %v409_v36  ;;  %v58_v36 = vld [vmem:[%s2733_s0 + $0xf8] sm:$0xff] }
  0x94   :  { %v106_v38 = vpack.c.bf16 %v58_v36, %v57_v35 }
  0x95   :  { %1671 = vmatmul.msk.bf16.vlgmr.msra.gmra.mxu1 %vm143_vm0, %v473_v40  ;;  %v1793_v40 = vld [vmem:[%s2735_s3 + $0x18] sm:$0xff] }
  0x96   :  { %v254_v42 = vpop.f32.mrf.mxu0  ;;  %1010 = vmatpush.bf16.msra.mxu2 %v1793_v40 }
  0x97   :  { %v255_v43 = vadd.f32 %v1921_v32, %v254_v42 }
  0x99   :  { %1640 = vmatmul.msk.bf16.gmra.mxu0 %vm143_vm0, %v100_v41  ;;  %v411_v46 = vmax.f32 %v255_v43, 0.0  ;;  %v1792_v41 = vld [vmem:[%s2735_s3 + $0x10] sm:$0xff] }
  0x9a   :  { %1011 = vmatpush.bf16.msra.mxu2 %v1792_v41 }
  0x9e   :  { %v256_v44 = vpop.f32.mrf.mxu0 }
  0x9f   :  { %v257_v45 = vadd.f32 %v1921_v32, %v256_v44 }
  0xa1   :  { %v412_v47 = vmax.f32 %v257_v45, 0.0 }
  0xa3   :  { %v474_v50 = vpack.c.bf16 %v412_v47, %v411_v46  ;;  %v59_v47 = vld [vmem:[%s2733_s0 + $0x100] sm:$0xff] }
  0xa5   :  { %1672 = vmatmul.msk.bf16.gmra.mxu1 %vm143_vm0, %v474_v50  ;;  %v107_v50 = vpack.c.bf16 %v60_v48, %v59_v47  ;;  %v67_v47 = vld [vmem:[%s2733_s0 + $0x140] sm:$0xff]  ;;  %v68_v48 = vld [vmem:[%s2733_s0 + $0x148] sm:$0xff] }
  0xa6   :  { %v259_v52 = vpop.f32.mrf.mxu0 }
  0xa7   :  { %v260_v53 = vadd.f32 %v1921_v32, %v259_v52 }
  0xa9   :  { %1641 = vmatmul.msk.bf16.gmra.mxu0 %vm143_vm0, %v101_v51  ;;  %v413_v56 = vmax.f32 %v260_v53, 0.0 }
  0xae   :  { %v261_v54 = vpop.f32.mrf.mxu0 }
  0xaf   :  { %v262_v55 = vadd.f32 %v1921_v32, %v261_v54 }
  0xb1   :  { %v414_v57 = vmax.f32 %v262_v55, 0.0 }
  0xb3   :  { %v475_v60 = vpack.c.bf16 %v414_v57, %v413_v56 }
  0xb5   :  { %1673 = vmatmul.msk.bf16.gmra.mxu1 %vm143_vm0, %v475_v60 }
  0xb6   :  { %v264_v62 = vpop.f32.mrf.mxu0 }
  0xb7   :  { %v265_v63 = vadd.f32 %v1921_v32, %v264_v62  ;;  %v108_v62 = vpack.c.bf16 %v62_v59, %v61_v58 }
  0xb9   :  { %1642 = vmatmul.msk.bf16.gmra.mxu0 %vm143_vm0, %v102_v61  ;;  %v415_v2 = vmax.f32 %v265_v63, 0.0  ;;  %v2021_v61 = vld [vmem:[%s2736_s4] ss:$0 sm:$0xff] }
  0xbe   :  { %v266_v0 = vpop.f32.mrf.mxu0 }
  0xbf   :  { %v267_v1 = vadd.f32 %v1921_v32, %v266_v0 }
  0xc1   :  { %v416_v3 = vmax.f32 %v267_v1, 0.0 }
  0xc3   :  { %v476_v6 = vpack.c.bf16 %v416_v3, %v415_v2 }
  0xc5   :  { %1674 = vmatmul.msk.bf16.gmra.mxu1 %vm143_vm0, %v476_v6 }
  0xc6   :  { %v269_v8 = vpop.f32.mrf.mxu0 }
  0xc7   :  { %v270_v9 = vadd.f32 %v1921_v32, %v269_v8 }
  0xc9   :  { %1643 = vmatmul.msk.bf16.gmra.mxu0 %vm143_vm0, %v103_v7  ;;  %v417_v12 = vmax.f32 %v270_v9, 0.0 }
  0xce   :  { %v271_v10 = vpop.f32.mrf.mxu0 }
  0xcf   :  { %v272_v11 = vadd.f32 %v1921_v32, %v271_v10 }
  0xd1   :  { %v418_v13 = vmax.f32 %v272_v11, 0.0 }
  0xd3   :  { %v477_v16 = vpack.c.bf16 %v418_v13, %v417_v12  ;;  %v63_v12 = vld [vmem:[%s2733_s0 + $0x120] sm:$0xff]  ;;  %v64_v13 = vld [vmem:[%s2733_s0 + $0x128] sm:$0xff] }
  0xd4   :  { %v109_v15 = vpack.c.bf16 %v64_v13, %v63_v12 }
  0xd5   :  { %1675 = vmatmul.msk.bf16.gmra.mxu1 %vm143_vm0, %v477_v16 }
  0xd6   :  { %v274_v18 = vpop.f32.mrf.mxu0 }
  0xd7   :  { %v275_v19 = vadd.f32 %v1921_v32, %v274_v18 }
  0xd9   :  { %1644 = vmatmul.msk.bf16.gmra.mxu0 %vm143_vm0, %v104_v17  ;;  %v419_v22 = vmax.f32 %v275_v19, 0.0 }
  0xde   :  { %v276_v20 = vpop.f32.mrf.mxu0 }
  0xdf   :  { %v277_v21 = vadd.f32 %v1921_v32, %v276_v20 }
  0xe1   :  { %v420_v23 = vmax.f32 %v277_v21, 0.0 }
  0xe3   :  { %v478_v26 = vpack.c.bf16 %v420_v23, %v419_v22 }
  0xe5   :  { %1676 = vmatmul.msk.bf16.gmra.mxu1 %vm143_vm0, %v478_v26 }
  0xe6   :  { %v279_v28 = vpop.f32.mrf.mxu0 }
  0xe7   :  { %v280_v29 = vadd.f32 %v1921_v32, %v279_v28 }
  0xe9   :  { %1645 = vmatmul.msk.bf16.gmra.mxu0 %vm143_vm0, %v105_v27  ;;  %v421_v33 = vmax.f32 %v280_v29, 0.0  ;;  %v65_v29 = vld [vmem:[%s2733_s0 + $0x130] sm:$0xff] }
  0xee   :  { %v281_v30 = vpop.f32.mrf.mxu0 }
  0xef   :  { %v282_v31 = vadd.f32 %v1921_v32, %v281_v30  ;;  %v66_v30 = vld [vmem:[%s2733_s0 + $0x138] sm:$0xff] }
  0xf1   :  { %v422_v34 = vmax.f32 %v282_v31, 0.0 }
  0xf3   :  { %v479_v37 = vpack.c.bf16 %v422_v34, %v421_v33  ;;  %v110_v33 = vpack.c.bf16 %v66_v30, %v65_v29 }
  0xf5   :  { %1677 = vmatmul.msk.bf16.gmra.mxu1 %vm143_vm0, %v479_v37 }
  0xf6   :  { %v284_v39 = vpop.f32.mrf.mxu0 }
  0xf7   :  { %v285_v42 = vadd.f32 %v1921_v32, %v284_v39 }
  0xf9   :  { %1646 = vmatmul.msk.bf16.gmra.mxu0 %vm143_vm0, %v106_v38  ;;  %v423_v45 = vmax.f32 %v285_v42, 0.0 }
  0xfe   :  { %v286_v43 = vpop.f32.mrf.mxu0 }
  0xff   :  { %v287_v44 = vadd.f32 %v1921_v32, %v286_v43 }
 0x101   :  { %v424_v46 = vmax.f32 %v287_v44, 0.0 }
 0x103   :  { %v480_v49 = vpack.c.bf16 %v424_v46, %v423_v45 }
 0x105   :  { %1678 = vmatmul.msk.bf16.gmra.mxu1 %vm143_vm0, %v480_v49 }
 0x106   :  { %v289_v51 = vpop.f32.mrf.mxu0 }
 0x107   :  { %v290_v52 = vadd.f32 %v1921_v32, %v289_v51 }
 0x109   :  { %1647 = vmatmul.msk.bf16.gmra.mxu0 %vm143_vm0, %v107_v50  ;;  %v425_v55 = vmax.f32 %v290_v52, 0.0  ;;  %v111_v50 = vpack.c.bf16 %v68_v48, %v67_v47 }
 0x10e   :  { %v291_v53 = vpop.f32.mrf.mxu0 }
 0x10f   :  { %v292_v54 = vadd.f32 %v1921_v32, %v291_v53 }
 0x111   :  { %v426_v56 = vmax.f32 %v292_v54, 0.0 }
 0x112   :  { %v630_v57 = vpop.f32.mrf.mxu1 }
 0x113   :  { %v481_v60 = vpack.c.bf16 %v426_v56, %v425_v55  ;;  %v631_v0 = vadd.f32 %v2021_v61, %v630_v57 }
 0x115   :  { %1679 = vmatmul.msk.bf16.gmra.mxu1 %vm143_vm0, %v481_v60  ;;  %v790_v3 = vmax.f32 %v631_v0, 0.0 }
 0x116   :  { %v294_v63 = vpop.f32.mrf.mxu0 }
 0x117   :  { %v295_v4 = vadd.f32 %v1921_v32, %v294_v63 }
 0x119   :  { %1648 = vmatmul.msk.bf16.gmra.mxu0 %vm143_vm0, %v108_v62  ;;  %v427_v9 = vmax.f32 %v295_v4, 0.0 }
 0x11a   :  { %v632_v1 = vpop.f32.mrf.mxu1 }
 0x11b   :  { %v633_v2 = vadd.f32 %v2021_v61, %v632_v1  ;;  %v69_v1 = vld [vmem:[%s2733_s0 + $0x150] sm:$0xff] }
 0x11d   :  { %v791_v5 = vmax.f32 %v633_v2, 0.0  ;;  %v70_v2 = vld [vmem:[%s2733_s0 + $0x158] sm:$0xff] }
 0x11e   :  { %v296_v6 = vpop.f32.mrf.mxu0  ;;  %v112_v4 = vpack.c.bf16 %v70_v2, %v69_v1 }
 0x11f   :  { %v297_v7 = vadd.f32 %v1921_v32, %v296_v6  ;;  %v854_v8 = vpack.c.bf16 %v791_v5, %v790_v3 }
 0x121   :  { %v428_v10 = vmax.f32 %v297_v7, 0.0  ;;  %1716 = vmatmul.msk.bf16.vlgmr.msra.gmra.mxu2 %vm143_vm0, %v854_v8 }
 0x122   :  { %v635_v11 = vpop.f32.mrf.mxu1 }
 0x123   :  { %v482_v14 = vpack.c.bf16 %v428_v10, %v427_v9  ;;  %v636_v17 = vadd.f32 %v2021_v61, %v635_v11 }
 0x125   :  { %1680 = vmatmul.msk.bf16.gmra.mxu1 %vm143_vm0, %v482_v14  ;;  %v792_v20 = vmax.f32 %v636_v17, 0.0 }
 0x126   :  { %v299_v16 = vpop.f32.mrf.mxu0 }
 0x127   :  { %v300_v21 = vadd.f32 %v1921_v32, %v299_v16 }
 0x129   :  { %1649 = vmatmul.msk.bf16.gmra.mxu0 %vm143_vm0, %v109_v15  ;;  %v429_v26 = vmax.f32 %v300_v21, 0.0 }
 0x12a   :  { %v637_v18 = vpop.f32.mrf.mxu1 }
 0x12b   :  { %v638_v19 = vadd.f32 %v2021_v61, %v637_v18  ;;  %v71_v18 = vld [vmem:[%s2733_s0 + $0x160] sm:$0xff] }
 0x12d   :  { %v793_v22 = vmax.f32 %v638_v19, 0.0  ;;  %v72_v19 = vld [vmem:[%s2733_s0 + $0x168] sm:$0xff] }
 0x12e   :  { %v301_v23 = vpop.f32.mrf.mxu0  ;;  %v113_v21 = vpack.c.bf16 %v72_v19, %v71_v18 }
 0x12f   :  { %v302_v24 = vadd.f32 %v1921_v32, %v301_v23  ;;  %v855_v25 = vpack.c.bf16 %v793_v22, %v792_v20 }
 0x131   :  { %v430_v27 = vmax.f32 %v302_v24, 0.0  ;;  %1717 = vmatmul.msk.bf16.gmra.mxu2 %vm143_vm0, %v855_v25 }
 0x132   :  { %v640_v28 = vpop.f32.mrf.mxu1 }
 0x133   :  { %v483_v31 = vpack.c.bf16 %v430_v27, %v429_v26  ;;  %v641_v35 = vadd.f32 %v2021_v61, %v640_v28 }
 0x135   :  { %1681 = vmatmul.msk.bf16.gmra.mxu1 %vm143_vm0, %v483_v31  ;;  %v794_v38 = vmax.f32 %v641_v35, 0.0 }
 0x136   :  { %v304_v34 = vpop.f32.mrf.mxu0 }
 0x137   :  { %v305_v39 = vadd.f32 %v1921_v32, %v304_v34 }
 0x139   :  { %1650 = vmatmul.msk.bf16.gmra.mxu0 %vm143_vm0, %v110_v33  ;;  %v431_v44 = vmax.f32 %v305_v39, 0.0 }
 0x13a   :  { %v642_v36 = vpop.f32.mrf.mxu1 }
 0x13b   :  { %v643_v37 = vadd.f32 %v2021_v61, %v642_v36  ;;  %v73_v36 = vld [vmem:[%s2733_s0 + $0x170] sm:$0xff] }
 0x13d   :  { %v795_v40 = vmax.f32 %v643_v37, 0.0  ;;  %v74_v37 = vld [vmem:[%s2733_s0 + $0x178] sm:$0xff] }
 0x13e   :  { %v306_v41 = vpop.f32.mrf.mxu0  ;;  %v114_v39 = vpack.c.bf16 %v74_v37, %v73_v36 }
 0x13f   :  { %v307_v42 = vadd.f32 %v1921_v32, %v306_v41  ;;  %v856_v43 = vpack.c.bf16 %v795_v40, %v794_v38 }
 0x141   :  { %v432_v45 = vmax.f32 %v307_v42, 0.0  ;;  %1718 = vmatmul.msk.bf16.gmra.mxu2 %vm143_vm0, %v856_v43 }
 0x142   :  { %v645_v46 = vpop.f32.mrf.mxu1 }
 0x143   :  { %v484_v49 = vpack.c.bf16 %v432_v45, %v431_v44  ;;  %v646_v52 = vadd.f32 %v2021_v61, %v645_v46 }
 0x145   :  { %1682 = vmatmul.msk.bf16.gmra.mxu1 %vm143_vm0, %v484_v49  ;;  %v796_v55 = vmax.f32 %v646_v52, 0.0 }
 0x146   :  { %v309_v51 = vpop.f32.mrf.mxu0 }
 0x147   :  { %v310_v56 = vadd.f32 %v1921_v32, %v309_v51 }
 0x149   :  { %1651 = vmatmul.msk.bf16.gmra.mxu0 %vm143_vm0, %v111_v50  ;;  %v433_v62 = vmax.f32 %v310_v56, 0.0 }
 0x14a   :  { %v647_v53 = vpop.f32.mrf.mxu1 }
 0x14b   :  { %v648_v54 = vadd.f32 %v2021_v61, %v647_v53  ;;  %v75_v53 = vld [vmem:[%s2733_s0 + $0x180] sm:$0xff] }
 0x14d   :  { %v797_v57 = vmax.f32 %v648_v54, 0.0  ;;  %v76_v54 = vld [vmem:[%s2733_s0 + $0x188] sm:$0xff] }
 0x14e   :  { %v311_v58 = vpop.f32.mrf.mxu0  ;;  %v115_v56 = vpack.c.bf16 %v76_v54, %v75_v53  ;;  %v82_v53 = vld [vmem:[%s2733_s0 + $0x1b8] sm:$0xff] }
 0x14f   :  { %v312_v59 = vadd.f32 %v1921_v32, %v311_v58  ;;  %v857_v60 = vpack.c.bf16 %v797_v57, %v796_v55 }
 0x151   :  { %v434_v63 = vmax.f32 %v312_v59, 0.0  ;;  %1719 = vmatmul.msk.bf16.gmra.mxu2 %vm143_vm0, %v857_v60  ;;  %v1795_v60 = vld [vmem:[%s2737_s5 + $0x8] sm:$0xff] }
 0x152   :  { %v650_v0 = vpop.f32.mrf.mxu1  ;;  %1391 = vmatpush.bf16.msra.mxu3 %v1795_v60 }
 0x153   :  { %v485_v3 = vpack.c.bf16 %v434_v63, %v433_v62  ;;  %v651_v6 = vadd.f32 %v2021_v61, %v650_v0 }
 0x155   :  { %1683 = vmatmul.msk.bf16.gmra.mxu1 %vm143_vm0, %v485_v3  ;;  %v798_v9 = vmax.f32 %v651_v6, 0.0  ;;  %v1794_v3 = vld [vmem:[%s2737_s5] sm:$0xff] }
 0x156   :  { %v314_v5 = vpop.f32.mrf.mxu0  ;;  %1392 = vmatpush.bf16.msra.mxu3 %v1794_v3 }
 0x157   :  { %v315_v10 = vadd.f32 %v1921_v32, %v314_v5 }
 0x159   :  { %1652 = vmatmul.msk.bf16.gmra.mxu0 %vm143_vm0, %v112_v4  ;;  %v435_v15 = vmax.f32 %v315_v10, 0.0  ;;  %v78_v10 = vld [vmem:[%s2733_s0 + $0x198] sm:$0xff] }
 0x15a   :  { %v652_v7 = vpop.f32.mrf.mxu1 }
 0x15b   :  { %v653_v8 = vadd.f32 %v2021_v61, %v652_v7 }
 0x15d   :  { %v799_v11 = vmax.f32 %v653_v8, 0.0 }
 0x15e   :  { %v316_v12 = vpop.f32.mrf.mxu0 }
 0x15f   :  { %v317_v13 = vadd.f32 %v1921_v32, %v316_v12  ;;  %v858_v14 = vpack.c.bf16 %v799_v11, %v798_v9  ;;  %v77_v9 = vld [vmem:[%s2733_s0 + $0x190] sm:$0xff] }
 0x160   :  { %v116_v12 = vpack.c.bf16 %v78_v10, %v77_v9 }
 0x161   :  { %v436_v16 = vmax.f32 %v317_v13, 0.0  ;;  %1720 = vmatmul.msk.bf16.gmra.mxu2 %vm143_vm0, %v858_v14 }
 0x162   :  { %v655_v17 = vpop.f32.mrf.mxu1 }
 0x163   :  { %v486_v20 = vpack.c.bf16 %v436_v16, %v435_v15  ;;  %v656_v23 = vadd.f32 %v2021_v61, %v655_v17 }
 0x165   :  { %1684 = vmatmul.msk.bf16.gmra.mxu1 %vm143_vm0, %v486_v20  ;;  %v800_v26 = vmax.f32 %v656_v23, 0.0 }
 0x166   :  { %v319_v22 = vpop.f32.mrf.mxu0 }
 0x167   :  { %v320_v27 = vadd.f32 %v1921_v32, %v319_v22 }
 0x169   :  { %1653 = vmatmul.msk.bf16.gmra.mxu0 %vm143_vm0, %v113_v21  ;;  %v437_v33 = vmax.f32 %v320_v27, 0.0  ;;  %v80_v27 = vld [vmem:[%s2733_s0 + $0x1a8] sm:$0xff] }
 0x16a   :  { %v657_v24 = vpop.f32.mrf.mxu1 }
 0x16b   :  { %v658_v25 = vadd.f32 %v2021_v61, %v657_v24 }
 0x16d   :  { %v801_v28 = vmax.f32 %v658_v25, 0.0 }
 0x16e   :  { %v321_v29 = vpop.f32.mrf.mxu0 }
 0x16f   :  { %v322_v30 = vadd.f32 %v1921_v32, %v321_v29  ;;  %v859_v31 = vpack.c.bf16 %v801_v28, %v800_v26  ;;  %v79_v26 = vld [vmem:[%s2733_s0 + $0x1a0] sm:$0xff] }
 0x171   :  { %v438_v34 = vmax.f32 %v322_v30, 0.0  ;;  %1721 = vmatmul.msk.bf16.gmra.mxu2 %vm143_vm0, %v859_v31  ;;  %v117_v30 = vpack.c.bf16 %v80_v27, %v79_v26 }
 0x172   :  { %v660_v35 = vpop.f32.mrf.mxu1 }
 0x173   :  { %v487_v38 = vpack.c.bf16 %v438_v34, %v437_v33  ;;  %v661_v41 = vadd.f32 %v2021_v61, %v660_v35  ;;  %v2150_v33 = vld [vmem:[%s2736_s4 + $0x1] ss:$0 sm:$0xff] }
 0x175   :  { %1685 = vmatmul.msk.bf16.gmra.mxu1 %vm143_vm0, %v487_v38  ;;  %v802_v44 = vmax.f32 %v661_v41, 0.0 }
 0x176   :  { %v324_v40 = vpop.f32.mrf.mxu0 }
 0x177   :  { %v325_v45 = vadd.f32 %v1921_v32, %v324_v40 }
 0x179   :  { %1654 = vmatmul.msk.bf16.gmra.mxu0 %vm143_vm0, %v114_v39  ;;  %v439_v50 = vmax.f32 %v325_v45, 0.0 }
 0x17a   :  { %v662_v42 = vpop.f32.mrf.mxu1 }
 0x17b   :  { %v663_v43 = vadd.f32 %v2021_v61, %v662_v42 }
 0x17d   :  { %v803_v46 = vmax.f32 %v663_v43, 0.0 }
 0x17e   :  { %v326_v47 = vpop.f32.mrf.mxu0 }
 0x17f   :  { %v327_v48 = vadd.f32 %v1921_v32, %v326_v47  ;;  %v860_v49 = vpack.c.bf16 %v803_v46, %v802_v44 }
 0x181   :  { %v440_v51 = vmax.f32 %v327_v48, 0.0  ;;  %1722 = vmatmul.msk.bf16.gmra.mxu2 %vm143_vm0, %v860_v49 }
 0x182   :  { %v665_v52 = vpop.f32.mrf.mxu1 }
 0x183   :  { %v488_v55 = vpack.c.bf16 %v440_v51, %v439_v50  ;;  %v666_v58 = vadd.f32 %v2021_v61, %v665_v52  ;;  %v81_v52 = vld [vmem:[%s2733_s0 + $0x1b0] sm:$0xff] }
 0x185   :  { %1686 = vmatmul.msk.bf16.gmra.mxu1 %vm143_vm0, %v488_v55  ;;  %v804_v63 = vmax.f32 %v666_v58, 0.0 }
 0x186   :  { %v329_v57 = vpop.f32.mrf.mxu0 }
 0x187   :  { %v330_v0 = vadd.f32 %v1921_v32, %v329_v57 }
 0x189   :  { %1655 = vmatmul.msk.bf16.gmra.mxu0 %vm143_vm0, %v115_v56  ;;  %v441_v6 = vmax.f32 %v330_v0, 0.0  ;;  %v118_v56 = vpack.c.bf16 %v82_v53, %v81_v52 }
 0x18a   :  { %v667_v59 = vpop.f32.mrf.mxu1 }
 0x18b   :  { %v668_v62 = vadd.f32 %v2021_v61, %v667_v59 }
 0x18d   :  { %v805_v1 = vmax.f32 %v668_v62, 0.0 }
 0x18e   :  { %v331_v2 = vpop.f32.mrf.mxu0 }
 0x18f   :  { %v332_v4 = vadd.f32 %v1921_v32, %v331_v2  ;;  %v861_v5 = vpack.c.bf16 %v805_v1, %v804_v63 }
 0x191   :  { %v442_v7 = vmax.f32 %v332_v4, 0.0  ;;  %1723 = vmatmul.msk.bf16.gmra.mxu2 %vm143_vm0, %v861_v5 }
 0x192   :  { %v670_v8 = vpop.f32.mrf.mxu1 }
 0x193   :  { %v489_v11 = vpack.c.bf16 %v442_v7, %v441_v6  ;;  %v671_v14 = vadd.f32 %v2021_v61, %v670_v8 }
 0x195   :  { %1687 = vmatmul.msk.bf16.gmra.mxu1 %vm143_vm0, %v489_v11  ;;  %v806_v17 = vmax.f32 %v671_v14, 0.0  ;;  %v84_v14 = vld [vmem:[%s2733_s0 + $0x1c8] sm:$0xff] }
 0x196   :  { %v334_v13 = vpop.f32.mrf.mxu0 }
 0x197   :  { %v335_v18 = vadd.f32 %v1921_v32, %v334_v13  ;;  %v83_v13 = vld [vmem:[%s2733_s0 + $0x1c0] sm:$0xff] }
 0x199   :  { %1656 = vmatmul.msk.bf16.gmra.mxu0 %vm143_vm0, %v116_v12  ;;  %v443_v23 = vmax.f32 %v335_v18, 0.0 }
 0x19a   :  { %v672_v15 = vpop.f32.mrf.mxu1 }
 0x19b   :  { %v673_v16 = vadd.f32 %v2021_v61, %v672_v15 }
 0x19d   :  { %v807_v19 = vmax.f32 %v673_v16, 0.0 }
 0x19e   :  { %v336_v20 = vpop.f32.mrf.mxu0 }
 0x19f   :  { %v337_v21 = vadd.f32 %v1921_v32, %v336_v20  ;;  %v862_v22 = vpack.c.bf16 %v807_v19, %v806_v17  ;;  %v119_v17 = vpack.c.bf16 %v84_v14, %v83_v13 }
 0x1a1   :  { %v444_v24 = vmax.f32 %v337_v21, 0.0  ;;  %1724 = vmatmul.msk.bf16.gmra.mxu2 %vm143_vm0, %v862_v22 }
 0x1a2   :  { %v675_v25 = vpop.f32.mrf.mxu1 }
 0x1a3   :  { %v490_v28 = vpack.c.bf16 %v444_v24, %v443_v23  ;;  %v676_v34 = vadd.f32 %v2021_v61, %v675_v25 }
 0x1a4   :  { %v1013_v29 = vpop.f32.mrf.mxu2 }
 0x1a5   :  { %1688 = vmatmul.msk.bf16.gmra.mxu1 %vm143_vm0, %v490_v28  ;;  %v1014_v36 = vadd.f32 %v2150_v33, %v1013_v29  ;;  %v808_v39 = vmax.f32 %v676_v34, 0.0 }
 0x1a6   :  { %v339_v31 = vpop.f32.mrf.mxu0 }
 0x1a7   :  { %v340_v40 = vadd.f32 %v1921_v32, %v339_v31  ;;  %v1173_v44 = vmax.f32 %v1014_v36, 0.0 }
 0x1a9   :  { %1657 = vmatmul.msk.bf16.gmra.mxu0 %vm143_vm0, %v117_v30  ;;  %v445_v48 = vmax.f32 %v340_v40, 0.0  ;;  %v86_v40 = vld [vmem:[%s2733_s0 + $0x1d8] sm:$0xff] }
 0x1aa   :  { %v677_v35 = vpop.f32.mrf.mxu1 }
 0x1ab   :  { %v678_v37 = vadd.f32 %v2021_v61, %v677_v35 }
 0x1ac   :  { %v1015_v38 = vpop.f32.mrf.mxu2 }
 0x1ad   :  { %v809_v41 = vmax.f32 %v678_v37, 0.0  ;;  %v1016_v42 = vadd.f32 %v2150_v33, %v1015_v38 }
 0x1ae   :  { %v341_v43 = vpop.f32.mrf.mxu0 }
 0x1af   :  { %v1174_v45 = vmax.f32 %v1016_v42, 0.0  ;;  %v342_v46 = vadd.f32 %v1921_v32, %v341_v43  ;;  %v863_v47 = vpack.c.bf16 %v809_v41, %v808_v39  ;;  %v85_v39 = vld [vmem:[%s2733_s0 + $0x1d0] sm:$0xff] }
 0x1b0   :  { %v120_v43 = vpack.c.bf16 %v86_v40, %v85_v39 }
 0x1b1   :  { %v446_v49 = vmax.f32 %v342_v46, 0.0  ;;  %1725 = vmatmul.msk.bf16.gmra.mxu2 %vm143_vm0, %v863_v47  ;;  %v1237_v50 = vpack.c.bf16 %v1174_v45, %v1173_v44 }
 0x1b2   :  { %v680_v51 = vpop.f32.mrf.mxu1 }
 0x1b3   :  { %v491_v54 = vpack.c.bf16 %v446_v49, %v445_v48  ;;  %1756 = vmatmul.msk.bf16.vlgmr.msra.gmra.mxu3 %vm143_vm0, %v1237_v50  ;;  %v681_v58 = vadd.f32 %v2021_v61, %v680_v51 }
 0x1b4   :  { %v1018_v55 = vpop.f32.mrf.mxu2 }
 0x1b5   :  { %1689 = vmatmul.msk.bf16.gmra.mxu1 %vm143_vm0, %v491_v54  ;;  %v1019_v60 = vadd.f32 %v2150_v33, %v1018_v55  ;;  %v810_v0 = vmax.f32 %v681_v58, 0.0 }
 0x1b6   :  { %v344_v57 = vpop.f32.mrf.mxu0 }
 0x1b7   :  { %v345_v1 = vadd.f32 %v1921_v32, %v344_v57  ;;  %v1175_v5 = vmax.f32 %v1019_v60, 0.0 }
 0x1b9   :  { %1658 = vmatmul.msk.bf16.gmra.mxu0 %vm143_vm0, %v118_v56  ;;  %v447_v9 = vmax.f32 %v345_v1, 0.0  ;;  %v88_v1 = vld [vmem:[%s2733_s0 + $0x1e8] sm:$0xff] }
 0x1ba   :  { %v682_v59 = vpop.f32.mrf.mxu1 }
 0x1bb   :  { %v683_v62 = vadd.f32 %v2021_v61, %v682_v59 }
 0x1bc   :  { %v1020_v63 = vpop.f32.mrf.mxu2 }
 0x1bd   :  { %v811_v2 = vmax.f32 %v683_v62, 0.0  ;;  %v1021_v3 = vadd.f32 %v2150_v33, %v1020_v63 }
 0x1be   :  { %v346_v4 = vpop.f32.mrf.mxu0 }
 0x1bf   :  { %v1176_v6 = vmax.f32 %v1021_v3, 0.0  ;;  %v347_v7 = vadd.f32 %v1921_v32, %v346_v4  ;;  %v864_v8 = vpack.c.bf16 %v811_v2, %v810_v0  ;;  %v87_v0 = vld [vmem:[%s2733_s0 + $0x1e0] sm:$0xff] }
 0x1c0   :  { %v121_v4 = vpack.c.bf16 %v88_v1, %v87_v0 }
 0x1c1   :  { %v448_v10 = vmax.f32 %v347_v7, 0.0  ;;  %1726 = vmatmul.msk.bf16.gmra.mxu2 %vm143_vm0, %v864_v8  ;;  %v1238_v11 = vpack.c.bf16 %v1176_v6, %v1175_v5 }
 0x1c2   :  { %v685_v12 = vpop.f32.mrf.mxu1 }
 0x1c3   :  { %v492_v15 = vpack.c.bf16 %v448_v10, %v447_v9  ;;  %1757 = vmatmul.msk.bf16.gmra.mxu3 %vm143_vm0, %v1238_v11  ;;  %v686_v19 = vadd.f32 %v2021_v61, %v685_v12 }
 0x1c4   :  { %v1023_v16 = vpop.f32.mrf.mxu2 }
 0x1c5   :  { %1690 = vmatmul.msk.bf16.gmra.mxu1 %vm143_vm0, %v492_v15  ;;  %v1024_v21 = vadd.f32 %v2150_v33, %v1023_v16  ;;  %v812_v24 = vmax.f32 %v686_v19, 0.0 }
 0x1c6   :  { %v349_v18 = vpop.f32.mrf.mxu0 }
 0x1c7   :  { %v350_v25 = vadd.f32 %v1921_v32, %v349_v18  ;;  %v1177_v29 = vmax.f32 %v1024_v21, 0.0 }
 0x1c9   :  { %1659 = vmatmul.msk.bf16.gmra.mxu0 %vm143_vm0, %v119_v17  ;;  %v449_v35 = vmax.f32 %v350_v25, 0.0  ;;  %v90_v25 = vld [vmem:[%s2733_s0 + $0x1f8] sm:$0xff] }
 0x1ca   :  { %v687_v20 = vpop.f32.mrf.mxu1 }
 0x1cb   :  { %v688_v22 = vadd.f32 %v2021_v61, %v687_v20 }
 0x1cc   :  { %v1025_v23 = vpop.f32.mrf.mxu2 }
 0x1cd   :  { %v813_v26 = vmax.f32 %v688_v22, 0.0  ;;  %v1026_v27 = vadd.f32 %v2150_v33, %v1025_v23 }
 0x1ce   :  { %v351_v28 = vpop.f32.mrf.mxu0 }
 0x1cf   :  { %v1178_v30 = vmax.f32 %v1026_v27, 0.0  ;;  %v352_v31 = vadd.f32 %v1921_v32, %v351_v28  ;;  %v865_v34 = vpack.c.bf16 %v813_v26, %v812_v24  ;;  %v89_v24 = vld [vmem:[%s2733_s0 + $0x1f0] sm:$0xff] }
 0x1d0   :  { %v122_v28 = vpack.c.bf16 %v90_v25, %v89_v24 }
 0x1d1   :  { %v450_v36 = vmax.f32 %v352_v31, 0.0  ;;  %1727 = vmatmul.msk.bf16.gmra.mxu2 %vm143_vm0, %v865_v34  ;;  %v1239_v37 = vpack.c.bf16 %v1178_v30, %v1177_v29 }
 0x1d2   :  { %v690_v38 = vpop.f32.mrf.mxu1 }
 0x1d3   :  { %v493_v41 = vpack.c.bf16 %v450_v36, %v449_v35  ;;  %1758 = vmatmul.msk.bf16.gmra.mxu3 %vm143_vm0, %v1239_v37  ;;  %v691_v45 = vadd.f32 %v2021_v61, %v690_v38 }
 0x1d4   :  { %v1028_v42 = vpop.f32.mrf.mxu2 }
 0x1d5   :  { %1691 = vmatmul.msk.bf16.gmra.mxu1 %vm143_vm0, %v493_v41  ;;  %v1029_v47 = vadd.f32 %v2150_v33, %v1028_v42  ;;  %v814_v50 = vmax.f32 %v691_v45, 0.0 }
 0x1d6   :  { %v354_v44 = vpop.f32.mrf.mxu0 }
 0x1d7   :  { %v355_v51 = vadd.f32 %v1921_v32, %v354_v44  ;;  %v1179_v55 = vmax.f32 %v1029_v47, 0.0 }
 0x1d9   :  { %1660 = vmatmul.msk.bf16.gmra.mxu0 %vm143_vm0, %v120_v43  ;;  %v451_v59 = vmax.f32 %v355_v51, 0.0 }
 0x1da   :  { %v692_v46 = vpop.f32.mrf.mxu1 }
 0x1db   :  { %v693_v48 = vadd.f32 %v2021_v61, %v692_v46 }
 0x1dc   :  { %v1030_v49 = vpop.f32.mrf.mxu2 }
 0x1dd   :  { %v815_v52 = vmax.f32 %v693_v48, 0.0  ;;  %v1031_v53 = vadd.f32 %v2150_v33, %v1030_v49 }
 0x1de   :  { %v356_v54 = vpop.f32.mrf.mxu0 }
 0x1df   :  { %v866_v56 = vpack.c.bf16 %v815_v52, %v814_v50  ;;  %v1180_v57 = vmax.f32 %v1031_v53, 0.0  ;;  %v357_v58 = vadd.f32 %v1921_v32, %v356_v54 }
 0x1e1   :  { %v452_v60 = vmax.f32 %v357_v58, 0.0  ;;  %1728 = vmatmul.msk.bf16.gmra.mxu2 %vm143_vm0, %v866_v56  ;;  %v1240_v62 = vpack.c.bf16 %v1180_v57, %v1179_v55 }
 0x1e2   :  { %v695_v63 = vpop.f32.mrf.mxu1 }
 0x1e3   :  { %v494_v2 = vpack.c.bf16 %v452_v60, %v451_v59  ;;  %1759 = vmatmul.msk.bf16.gmra.mxu3 %vm143_vm0, %v1240_v62  ;;  %v696_v6 = vadd.f32 %v2021_v61, %v695_v63 }
 0x1e4   :  { %v1033_v3 = vpop.f32.mrf.mxu2 }
 0x1e5   :  { %1692 = vmatmul.msk.bf16.gmra.mxu1 %vm143_vm0, %v494_v2  ;;  %v1034_v8 = vadd.f32 %v2150_v33, %v1033_v3  ;;  %v816_v11 = vmax.f32 %v696_v6, 0.0 }
 0x1e6   :  { %v359_v5 = vpop.f32.mrf.mxu0 }
 0x1e7   :  { %v360_v12 = vadd.f32 %v1921_v32, %v359_v5  ;;  %v1181_v16 = vmax.f32 %v1034_v8, 0.0 }
 0x1e9   :  { %1661 = vmatmul.msk.bf16.gmra.mxu0 %vm143_vm0, %v121_v4  ;;  %v453_v20 = vmax.f32 %v360_v12, 0.0 }
 0x1ea   :  { %v697_v7 = vpop.f32.mrf.mxu1 }
 0x1eb   :  { %v698_v9 = vadd.f32 %v2021_v61, %v697_v7 }
 0x1ec   :  { %v1035_v10 = vpop.f32.mrf.mxu2 }
 0x1ed   :  { %v817_v13 = vmax.f32 %v698_v9, 0.0  ;;  %v1036_v14 = vadd.f32 %v2150_v33, %v1035_v10 }
 0x1ee   :  { %v361_v15 = vpop.f32.mrf.mxu0 }
 0x1ef   :  { %v867_v17 = vpack.c.bf16 %v817_v13, %v816_v11  ;;  %v1182_v18 = vmax.f32 %v1036_v14, 0.0  ;;  %v362_v19 = vadd.f32 %v1921_v32, %v361_v15 }
 0x1f1   :  { %v454_v21 = vmax.f32 %v362_v19, 0.0  ;;  %1729 = vmatmul.msk.bf16.gmra.mxu2 %vm143_vm0, %v867_v17  ;;  %v1241_v22 = vpack.c.bf16 %v1182_v18, %v1181_v16 }
 0x1f2   :  { %v700_v23 = vpop.f32.mrf.mxu1 }
 0x1f3   :  { %v495_v26 = vpack.c.bf16 %v454_v21, %v453_v20  ;;  %1760 = vmatmul.msk.bf16.gmra.mxu3 %vm143_vm0, %v1241_v22  ;;  %v701_v30 = vadd.f32 %v2021_v61, %v700_v23 }
 0x1f4   :  { %v1038_v27 = vpop.f32.mrf.mxu2 }
 0x1f5   :  { %1693 = vmatmul.msk.bf16.gmra.mxu1 %vm143_vm0, %v495_v26  ;;  %v1039_v34 = vadd.f32 %v2150_v33, %v1038_v27  ;;  %v818_v37 = vmax.f32 %v701_v30, 0.0 }
 0x1f6   :  { %v364_v29 = vpop.f32.mrf.mxu0 }
 0x1f7   :  { %v365_v38 = vadd.f32 %v1921_v32, %v364_v29  ;;  %v1183_v42 = vmax.f32 %v1039_v34, 0.0 }
 0x1f9   :  { %1662 = vmatmul.msk.bf16.gmra.mxu0 %vm143_vm0, %v122_v28  ;;  %v455_v46 = vmax.f32 %v365_v38, 0.0 }
 0x1fa   :  { %v702_v31 = vpop.f32.mrf.mxu1 }
 0x1fb   :  { %v703_v35 = vadd.f32 %v2021_v61, %v702_v31 }
 0x1fc   :  { %v1040_v36 = vpop.f32.mrf.mxu2 }
 0x1fd   :  { %v819_v39 = vmax.f32 %v703_v35, 0.0  ;;  %v1041_v40 = vadd.f32 %v2150_v33, %v1040_v36 }
 0x1fe   :  { %v366_v41 = vpop.f32.mrf.mxu0 }
 0x1ff   :  { %v868_v43 = vpack.c.bf16 %v819_v39, %v818_v37  ;;  %v1184_v44 = vmax.f32 %v1041_v40, 0.0  ;;  %v367_v45 = vadd.f32 %v1921_v32, %v366_v41  ;;  %v2266_v39 = vld [vmem:[%s2734_s2] ss:$0 sm:$0xff] }
 0x201   :  { %v456_v47 = vmax.f32 %v367_v45, 0.0  ;;  %1730 = vmatmul.msk.bf16.gmra.mxu2 %vm143_vm0, %v868_v43  ;;  %v1242_v48 = vpack.c.bf16 %v1184_v44, %v1183_v42 }
 0x202   :  { %v705_v49 = vpop.f32.mrf.mxu1 }
 0x203   :  { %v496_v50 = vpack.c.bf16 %v456_v47, %v455_v46  ;;  %1761 = vmatmul.msk.bf16.gmra.mxu3 %vm143_vm0, %v1242_v48  ;;  %v706_v53 = vadd.f32 %v2021_v61, %v705_v49 }
 0x204   :  { %v1043_v51 = vpop.f32.mrf.mxu2 }
 0x205   :  { %1694 = vmatmul.msk.bf16.gmra.mxu1 %vm143_vm0, %v496_v50  ;;  %v1044_v55 = vadd.f32 %v2150_v33, %v1043_v51  ;;  %v820_v58 = vmax.f32 %v706_v53, 0.0  ;;  %v2276_v53 = vld [vmem:[%s2738_s6] ss:$0 sm:$0xff] }
 0x206   :  { %v369_v52 = vpop.f32.mrf.mxu0 }
 0x207   :  { %v370_v59 = vadd.f32 %v1921_v32, %v369_v52  ;;  %v1185_v0 = vmax.f32 %v1044_v55, 0.0 }
 0x209   :  { %v457_v4 = vmax.f32 %v370_v59, 0.0 }
 0x20a   :  { %v707_v54 = vpop.f32.mrf.mxu1 }
 0x20b   :  { %v708_v56 = vadd.f32 %v2021_v61, %v707_v54 }
 0x20c   :  { %v1045_v57 = vpop.f32.mrf.mxu2 }
 0x20d   :  { %v821_v60 = vmax.f32 %v708_v56, 0.0  ;;  %v1046_v62 = vadd.f32 %v2150_v33, %v1045_v57 }
 0x20e   :  { %v371_v63 = vpop.f32.mrf.mxu0 }
 0x20f   :  { %v869_v1 = vpack.c.bf16 %v821_v60, %v820_v58  ;;  %v1186_v2 = vmax.f32 %v1046_v62, 0.0  ;;  %v372_v3 = vadd.f32 %v1921_v32, %v371_v63 }
 0x211   :  { %v458_v5 = vmax.f32 %v372_v3, 0.0  ;;  %1731 = vmatmul.msk.bf16.gmra.mxu2 %vm143_vm0, %v869_v1  ;;  %v1243_v6 = vpack.c.bf16 %v1186_v2, %v1185_v0 }
 0x212   :  { %v710_v7 = vpop.f32.mrf.mxu1 }
 0x213   :  { %v497_v8 = vpack.c.bf16 %v458_v5, %v457_v4  ;;  %1762 = vmatmul.msk.bf16.gmra.mxu3 %vm143_vm0, %v1243_v6  ;;  %v711_v11 = vadd.f32 %v2021_v61, %v710_v7 }
 0x214   :  { %v1048_v9 = vpop.f32.mrf.mxu2 }
 0x215   :  { %1695 = vmatmul.msk.bf16.gmra.mxu1 %vm143_vm0, %v497_v8  ;;  %v1049_v13 = vadd.f32 %v2150_v33, %v1048_v9  ;;  %v822_v16 = vmax.f32 %v711_v11, 0.0 }
 0x216   :  { %v374_v10 = vpop.f32.mrf.mxu0 }
 0x217   :  { %v375_v17 = vadd.f32 %v1921_v32, %v374_v10  ;;  %v1187_v21 = vmax.f32 %v1049_v13, 0.0 }
 0x219   :  { %v459_v25 = vmax.f32 %v375_v17, 0.0 }
 0x21a   :  { %v712_v12 = vpop.f32.mrf.mxu1 }
 0x21b   :  { %v713_v14 = vadd.f32 %v2021_v61, %v712_v12 }
 0x21c   :  { %v1050_v15 = vpop.f32.mrf.mxu2 }
 0x21d   :  { %v823_v18 = vmax.f32 %v713_v14, 0.0  ;;  %v1051_v19 = vadd.f32 %v2150_v33, %v1050_v15 }
 0x21e   :  { %v376_v20 = vpop.f32.mrf.mxu0 }
 0x21f   :  { %v870_v22 = vpack.c.bf16 %v823_v18, %v822_v16  ;;  %v1188_v23 = vmax.f32 %v1051_v19, 0.0  ;;  %v377_v24 = vadd.f32 %v1921_v32, %v376_v20 }
 0x221   :  { %v460_v26 = vmax.f32 %v377_v24, 0.0  ;;  %1732 = vmatmul.msk.bf16.gmra.mxu2 %vm143_vm0, %v870_v22  ;;  %v1244_v27 = vpack.c.bf16 %v1188_v23, %v1187_v21 }
 0x222   :  { %v715_v28 = vpop.f32.mrf.mxu1 }
 0x223   :  { %v498_v29 = vpack.c.bf16 %v460_v26, %v459_v25  ;;  %1763 = vmatmul.msk.bf16.gmra.mxu3 %vm143_vm0, %v1244_v27  ;;  %v716_v34 = vadd.f32 %v2021_v61, %v715_v28 }
 0x224   :  { %v1053_v30 = vpop.f32.mrf.mxu2 }
 0x225   :  { %1696 = vmatmul.msk.bf16.gmra.mxu1 %vm143_vm0, %v498_v29  ;;  %v1054_v36 = vadd.f32 %v2150_v33, %v1053_v30  ;;  %v824_v38 = vmax.f32 %v716_v34, 0.0 }
 0x226   :  { %v379_v31 = vpop.f32.mrf.mxu0 }
 0x227   :  { %v380_v40 = vadd.f32 %v2266_v39, %v379_v31  ;;  %v1189_v44 = vmax.f32 %v1054_v36, 0.0 }
 0x229   :  { %v461_v48 = vmax.f32 %v380_v40, 0.0 }
 0x22a   :  { %v717_v35 = vpop.f32.mrf.mxu1 }
 0x22b   :  { %v718_v32 = vadd.f32 %v2021_v61, %v717_v35 }
 0x22c   :  { %v1055_v37 = vpop.f32.mrf.mxu2 }
 0x22d   :  { %v825_v41 = vmax.f32 %v718_v32, 0.0  ;;  %v1056_v42 = vadd.f32 %v2150_v33, %v1055_v37 }
 0x22e   :  { %v381_v43 = vpop.f32.mrf.mxu0 }
 0x22f   :  { %v871_v45 = vpack.c.bf16 %v825_v41, %v824_v38  ;;  %v1190_v46 = vmax.f32 %v1056_v42, 0.0  ;;  %v382_v47 = vadd.f32 %v2266_v39, %v381_v43 }
 0x231   :  { %v462_v49 = vmax.f32 %v382_v47, 0.0  ;;  %1733 = vmatmul.msk.bf16.gmra.mxu2 %vm143_vm0, %v871_v45  ;;  %v1245_v50 = vpack.c.bf16 %v1190_v46, %v1189_v44 }
 0x232   :  { %v720_v51 = vpop.f32.mrf.mxu1 }
 0x233   :  { %v499_v52 = vpack.c.bf16 %v462_v49, %v461_v48  ;;  %1764 = vmatmul.msk.bf16.gmra.mxu3 %vm143_vm0, %v1245_v50  ;;  %v721_v58 = vadd.f32 %v2021_v61, %v720_v51 }
 0x234   :  { %v1058_v54 = vpop.f32.mrf.mxu2 }
 0x235   :  { %1697 = vmatmul.msk.bf16.gmra.mxu1 %vm143_vm0, %v499_v52  ;;  %v1059_v59 = vadd.f32 %v2150_v33, %v1058_v54  ;;  %v826_v0 = vmax.f32 %v721_v58, 0.0 }
 0x236   :  { %v384_v55 = vpop.f32.mrf.mxu0  ;;  %v1394_v56 = vpop.f32.mrf.mxu3 }
 0x237   :  { %v1395_v57 = vadd.f32 %v2276_v53, %v1394_v56  ;;  %v385_v1 = vadd.f32 %v2266_v39, %v384_v55  ;;  %v1191_v4 = vmax.f32 %v1059_v59, 0.0 }
 0x239   :  { %1555 = vst.msk [vmem:[%s2739_s7] sm:$0xff] %vm1554_vm1, %v1395_v57  ;;  %v463_v11 = vmax.f32 %v385_v1, 0.0 }
 0x23a   :  { %v722_v60 = vpop.f32.mrf.mxu1 }
 0x23b   :  { %v723_v62 = vadd.f32 %v2021_v61, %v722_v60 }
 0x23c   :  { %v1060_v63 = vpop.f32.mrf.mxu2 }
 0x23d   :  { %v827_v2 = vmax.f32 %v723_v62, 0.0  ;;  %v1061_v3 = vadd.f32 %v2150_v33, %v1060_v63 }
 0x23e   :  { %v386_v5 = vpop.f32.mrf.mxu0  ;;  %v1396_v6 = vpop.f32.mrf.mxu3 }
 0x23f   :  { %v872_v7 = vpack.c.bf16 %v827_v2, %v826_v0  ;;  %v1192_v8 = vmax.f32 %v1061_v3, 0.0  ;;  %v387_v9 = vadd.f32 %v2266_v39, %v386_v5  ;;  %v1397_v10 = vadd.f32 %v2276_v53, %v1396_v6 }
 0x241   :  { %v464_v12 = vmax.f32 %v387_v9, 0.0  ;;  %1556 = vst.msk [vmem:[%s2739_s7 + $0x8] sm:$0xff] %vm1554_vm1, %v1397_v10  ;;  %1734 = vmatmul.msk.bf16.gmra.mxu2 %vm143_vm0, %v872_v7  ;;  %v1246_v13 = vpack.c.bf16 %v1192_v8, %v1191_v4  ;;  %v2340_v9 = vld [vmem:[%s2736_s4] ss:$0 sm:$0xff] }
 0x242   :  { %v725_v14 = vpop.f32.mrf.mxu1 }
 0x243   :  { %v500_v15 = vpack.c.bf16 %v464_v12, %v463_v11  ;;  %1765 = vmatmul.msk.bf16.gmra.mxu3 %vm143_vm0, %v1246_v13  ;;  %v726_v20 = vadd.f32 %v2021_v61, %v725_v14 }
 0x244   :  { %v1063_v16 = vpop.f32.mrf.mxu2 }
 0x245   :  { %1698 = vmatmul.msk.bf16.gmra.mxu1 %vm143_vm0, %v500_v15  ;;  %v1064_v21 = vadd.f32 %v2150_v33, %v1063_v16  ;;  %v828_v25 = vmax.f32 %v726_v20, 0.0 }
 0x246   :  { %v389_v17 = vpop.f32.mrf.mxu0  ;;  %v1399_v18 = vpop.f32.mrf.mxu3 }
 0x247   :  { %v1400_v19 = vadd.f32 %v2276_v53, %v1399_v18  ;;  %v390_v26 = vadd.f32 %v2266_v39, %v389_v17  ;;  %v1193_v29 = vmax.f32 %v1064_v21, 0.0 }
 0x249   :  { %1557 = vst.msk [vmem:[%s2739_s7 + $0x10] sm:$0xff] %vm1554_vm1, %v1400_v19  ;;  %v465_v37 = vmax.f32 %v390_v26, 0.0 }
 0x24a   :  { %v727_v22 = vpop.f32.mrf.mxu1 }
 0x24b   :  { %v728_v23 = vadd.f32 %v2021_v61, %v727_v22 }
 0x24c   :  { %v1065_v24 = vpop.f32.mrf.mxu2 }
 0x24d   :  { %v829_v27 = vmax.f32 %v728_v23, 0.0  ;;  %v1066_v28 = vadd.f32 %v2150_v33, %v1065_v24 }
 0x24e   :  { %v391_v30 = vpop.f32.mrf.mxu0  ;;  %v1401_v31 = vpop.f32.mrf.mxu3 }
 0x24f   :  { %v873_v34 = vpack.c.bf16 %v829_v27, %v828_v25  ;;  %v1194_v35 = vmax.f32 %v1066_v28, 0.0  ;;  %v392_v36 = vadd.f32 %v2266_v39, %v391_v30  ;;  %v1402_v32 = vadd.f32 %v2276_v53, %v1401_v31 }
 0x251   :  { %v466_v38 = vmax.f32 %v392_v36, 0.0  ;;  %1558 = vst.msk [vmem:[%s2739_s7 + $0x18] sm:$0xff] %vm1554_vm1, %v1402_v32  ;;  %1735 = vmatmul.msk.bf16.gmra.mxu2 %vm143_vm0, %v873_v34  ;;  %v1247_v40 = vpack.c.bf16 %v1194_v35, %v1193_v29 }
 0x252   :  { %v730_v41 = vpop.f32.mrf.mxu1 }
 0x253   :  { %v501_v42 = vpack.c.bf16 %v466_v38, %v465_v37  ;;  %1766 = vmatmul.msk.bf16.gmra.mxu3 %vm143_vm0, %v1247_v40  ;;  %v731_v47 = vadd.f32 %v2021_v61, %v730_v41 }
 0x254   :  { %v1068_v43 = vpop.f32.mrf.mxu2 }
 0x255   :  { %1699 = vmatmul.msk.bf16.gmra.mxu1 %vm143_vm0, %v501_v42  ;;  %v1069_v48 = vadd.f32 %v2150_v33, %v1068_v43  ;;  %v830_v52 = vmax.f32 %v731_v47, 0.0 }
 0x256   :  { %v394_v44 = vpop.f32.mrf.mxu0  ;;  %v1404_v45 = vpop.f32.mrf.mxu3 }
 0x257   :  { %v1405_v46 = vadd.f32 %v2276_v53, %v1404_v45  ;;  %v395_v54 = vadd.f32 %v2266_v39, %v394_v44  ;;  %v1195_v57 = vmax.f32 %v1069_v48, 0.0 }
 0x259   :  { %1559 = vst.msk [vmem:[%s2739_s7 + $0x20] sm:$0xff] %vm1554_vm1, %v1405_v46  ;;  %v467_v1 = vmax.f32 %v395_v54, 0.0 }
 0x25a   :  { %v732_v49 = vpop.f32.mrf.mxu1 }
 0x25b   :  { %v733_v50 = vadd.f32 %v2021_v61, %v732_v49 }
 0x25c   :  { %v1070_v51 = vpop.f32.mrf.mxu2 }
 0x25d   :  { %v831_v55 = vmax.f32 %v733_v50, 0.0  ;;  %v1071_v56 = vadd.f32 %v2150_v33, %v1070_v51 }
 0x25e   :  { %v396_v58 = vpop.f32.mrf.mxu0  ;;  %v1406_v59 = vpop.f32.mrf.mxu3 }
 0x25f   :  { %v874_v60 = vpack.c.bf16 %v831_v55, %v830_v52  ;;  %v1196_v62 = vmax.f32 %v1071_v56, 0.0  ;;  %v397_v63 = vadd.f32 %v2266_v39, %v396_v58  ;;  %v1407_v0 = vadd.f32 %v2276_v53, %v1406_v59 }
 0x261   :  { %v468_v2 = vmax.f32 %v397_v63, 0.0  ;;  %1560 = vst.msk [vmem:[%s2739_s7 + $0x28] sm:$0xff] %vm1554_vm1, %v1407_v0  ;;  %1736 = vmatmul.msk.bf16.gmra.mxu2 %vm143_vm0, %v874_v60  ;;  %v1248_v61 = vpack.c.bf16 %v1196_v62, %v1195_v57 }
 0x262   :  { %v735_v3 = vpop.f32.mrf.mxu1 }
 0x263   :  { %v502_v4 = vpack.c.bf16 %v468_v2, %v467_v1  ;;  %1767 = vmatmul.msk.bf16.gmra.mxu3 %vm143_vm0, %v1248_v61  ;;  %v736_v10 = vadd.f32 %v2340_v9, %v735_v3 }
 0x264   :  { %v1073_v5 = vpop.f32.mrf.mxu2 }
 0x265   :  { %1700 = vmatmul.msk.bf16.gmra.mxu1 %vm143_vm0, %v502_v4  ;;  %v1074_v11 = vadd.f32 %v2150_v33, %v1073_v5  ;;  %v832_v15 = vmax.f32 %v736_v10, 0.0 }
 0x266   :  { %v399_v6 = vpop.f32.mrf.mxu0  ;;  %v1409_v7 = vpop.f32.mrf.mxu3 }
 0x267   :  { %v1410_v8 = vadd.f32 %v2276_v53, %v1409_v7  ;;  %v400_v16 = vadd.f32 %v2266_v39, %v399_v6  ;;  %v1197_v19 = vmax.f32 %v1074_v11, 0.0 }
 0x269   :  { %1561 = vst.msk [vmem:[%s2739_s7 + $0x30] sm:$0xff] %vm1554_vm1, %v1410_v8  ;;  %v469_v26 = vmax.f32 %v400_v16, 0.0 }
 0x26a   :  { %v737_v12 = vpop.f32.mrf.mxu1 }
 0x26b   :  { %v738_v13 = vadd.f32 %v2340_v9, %v737_v12 }
 0x26c   :  { %v1075_v14 = vpop.f32.mrf.mxu2 }
 0x26d   :  { %v833_v17 = vmax.f32 %v738_v13, 0.0  ;;  %v1076_v18 = vadd.f32 %v2150_v33, %v1075_v14 }
 0x26e   :  { %v401_v20 = vpop.f32.mrf.mxu0  ;;  %v1411_v21 = vpop.f32.mrf.mxu3 }
 0x26f   :  { %v875_v22 = vpack.c.bf16 %v833_v17, %v832_v15  ;;  %v1198_v23 = vmax.f32 %v1076_v18, 0.0  ;;  %v402_v24 = vadd.f32 %v2266_v39, %v401_v20  ;;  %v1412_v25 = vadd.f32 %v2276_v53, %v1411_v21 }
 0x271   :  { %v1249_v27 = vpack.c.bf16 %v1198_v23, %v1197_v19  ;;  %v470_v28 = vmax.f32 %v402_v24, 0.0  ;;  %1562 = vst.msk [vmem:[%s2739_s7 + $0x38] sm:$0xff] %vm1554_vm1, %v1412_v25  ;;  %1737 = vmatmul.msk.bf16.gmra.mxu2 %vm143_vm0, %v875_v22 }
 0x272   :  { %v740_v29 = vpop.f32.mrf.mxu1 }
 0x273   :  { %v503_v30 = vpack.c.bf16 %v470_v28, %v469_v26  ;;  %1768 = vmatmul.msk.bf16.gmra.mxu3 %vm143_vm0, %v1249_v27  ;;  %v741_v32 = vadd.f32 %v2340_v9, %v740_v29 }
 0x274   :  { %v1078_v31 = vpop.f32.mrf.mxu2 }
 0x275   :  { %1701 = vmatmul.msk.bf16.gmra.mxu1 %vm143_vm0, %v503_v30  ;;  %v1079_v37 = vadd.f32 %v2150_v33, %v1078_v31  ;;  %v834_v42 = vmax.f32 %v741_v32, 0.0 }
 0x276   :  { %v404_v34 = vpop.f32.mrf.mxu0  ;;  %v1414_v35 = vpop.f32.mrf.mxu3 }
 0x277   :  { %v1415_v36 = vadd.f32 %v2276_v53, %v1414_v35  ;;  %v405_v43 = vadd.f32 %v2266_v39, %v404_v34  ;;  %v1199_v46 = vmax.f32 %v1079_v37, 0.0 }
 0x279   :  { %1563 = vst.msk [vmem:[%s2739_s7 + $0x40] sm:$0xff] %vm1554_vm1, %v1415_v36  ;;  %v471_v54 = vmax.f32 %v405_v43, 0.0 }
 0x27a   :  { %v742_v38 = vpop.f32.mrf.mxu1 }
 0x27b   :  { %v743_v40 = vadd.f32 %v2340_v9, %v742_v38 }
 0x27c   :  { %v1080_v41 = vpop.f32.mrf.mxu2 }
 0x27d   :  { %v835_v44 = vmax.f32 %v743_v40, 0.0  ;;  %v1081_v45 = vadd.f32 %v2150_v33, %v1080_v41 }
 0x27e   :  { %v406_v47 = vpop.f32.mrf.mxu0  ;;  %v1416_v48 = vpop.f32.mrf.mxu3 }
 0x27f   :  { %v876_v49 = vpack.c.bf16 %v835_v44, %v834_v42  ;;  %v1200_v50 = vmax.f32 %v1081_v45, 0.0  ;;  %v407_v51 = vadd.f32 %v2266_v39, %v406_v47  ;;  %v1417_v52 = vadd.f32 %v2276_v53, %v1416_v48 }
 0x281   :  { %v1250_v55 = vpack.c.bf16 %v1200_v50, %v1199_v46  ;;  %v472_v56 = vmax.f32 %v407_v51, 0.0  ;;  %1564 = vst.msk [vmem:[%s2739_s7 + $0x48] sm:$0xff] %vm1554_vm1, %v1417_v52  ;;  %1738 = vmatmul.msk.bf16.gmra.mxu2 %vm143_vm0, %v876_v49 }
 0x282   :  { %v745_v57 = vpop.f32.mrf.mxu1 }
 0x283   :  { %v504_v58 = vpack.c.bf16 %v472_v56, %v471_v54  ;;  %1769 = vmatmul.msk.bf16.gmra.mxu3 %vm143_vm0, %v1250_v55  ;;  %v746_v62 = vadd.f32 %v2340_v9, %v745_v57 }
 0x284   :  { %v1083_v59 = vpop.f32.mrf.mxu2 }
 0x285   :  { %1702 = vmatmul.msk.bf16.gmra.mxu1 %vm143_vm0, %v504_v58  ;;  %v1084_v0 = vadd.f32 %v2150_v33, %v1083_v59  ;;  %v836_v61 = vmax.f32 %v746_v62, 0.0 }
 0x286   :  { %v1419_v39 = vpop.f32.mrf.mxu3 }
 0x287   :  { %v1420_v60 = vadd.f32 %v2276_v53, %v1419_v39  ;;  %v1201_v6 = vmax.f32 %v1084_v0, 0.0 }
 0x289   :  { %1565 = vst.msk [vmem:[%s2739_s7 + $0x50] sm:$0xff] %vm1554_vm1, %v1420_v60 }
 0x28a   :  { %v747_v63 = vpop.f32.mrf.mxu1 }
 0x28b   :  { %v748_v1 = vadd.f32 %v2340_v9, %v747_v63 }
 0x28c   :  { %v1085_v2 = vpop.f32.mrf.mxu2 }
 0x28d   :  { %v837_v3 = vmax.f32 %v748_v1, 0.0  ;;  %v1086_v4 = vadd.f32 %v2150_v33, %v1085_v2 }
 0x28e   :  { %v1421_v5 = vpop.f32.mrf.mxu3 }
 0x28f   :  { %v877_v7 = vpack.c.bf16 %v837_v3, %v836_v61  ;;  %v1202_v8 = vmax.f32 %v1086_v4, 0.0  ;;  %v1422_v10 = vadd.f32 %v2276_v53, %v1421_v5 }
 0x291   :  { %v1251_v11 = vpack.c.bf16 %v1202_v8, %v1201_v6  ;;  %1566 = vst.msk [vmem:[%s2739_s7 + $0x58] sm:$0xff] %vm1554_vm1, %v1422_v10  ;;  %1739 = vmatmul.msk.bf16.gmra.mxu2 %vm143_vm0, %v877_v7 }
 0x292   :  { %v750_v12 = vpop.f32.mrf.mxu1 }
 0x293   :  { %1770 = vmatmul.msk.bf16.gmra.mxu3 %vm143_vm0, %v1251_v11  ;;  %v751_v16 = vadd.f32 %v2340_v9, %v750_v12 }
 0x294   :  { %v1088_v13 = vpop.f32.mrf.mxu2 }
 0x295   :  { %v1089_v18 = vadd.f32 %v2150_v33, %v1088_v13  ;;  %v838_v21 = vmax.f32 %v751_v16, 0.0 }
 0x296   :  { %v1424_v14 = vpop.f32.mrf.mxu3 }
 0x297   :  { %v1425_v15 = vadd.f32 %v2276_v53, %v1424_v14  ;;  %v1203_v25 = vmax.f32 %v1089_v18, 0.0 }
 0x299   :  { %1567 = vst.msk [vmem:[%s2739_s7 + $0x60] sm:$0xff] %vm1554_vm1, %v1425_v15 }
 0x29a   :  { %v752_v17 = vpop.f32.mrf.mxu1 }
 0x29b   :  { %v753_v19 = vadd.f32 %v2340_v9, %v752_v17 }
 0x29c   :  { %v1090_v20 = vpop.f32.mrf.mxu2 }
 0x29d   :  { %v839_v22 = vmax.f32 %v753_v19, 0.0  ;;  %v1091_v23 = vadd.f32 %v2150_v33, %v1090_v20 }
 0x29e   :  { %v1426_v24 = vpop.f32.mrf.mxu3 }
 0x29f   :  { %v878_v26 = vpack.c.bf16 %v839_v22, %v838_v21  ;;  %v1204_v27 = vmax.f32 %v1091_v23, 0.0  ;;  %v1427_v28 = vadd.f32 %v2276_v53, %v1426_v24 }
 0x2a1   :  { %v1252_v29 = vpack.c.bf16 %v1204_v27, %v1203_v25  ;;  %1568 = vst.msk [vmem:[%s2739_s7 + $0x68] sm:$0xff] %vm1554_vm1, %v1427_v28  ;;  %1740 = vmatmul.msk.bf16.gmra.mxu2 %vm143_vm0, %v878_v26 }
 0x2a2   :  { %v755_v30 = vpop.f32.mrf.mxu1 }
 0x2a3   :  { %1771 = vmatmul.msk.bf16.gmra.mxu3 %vm143_vm0, %v1252_v29  ;;  %v756_v36 = vadd.f32 %v2340_v9, %v755_v30 }
 0x2a4   :  { %v1093_v31 = vpop.f32.mrf.mxu2 }
 0x2a5   :  { %v1094_v37 = vadd.f32 %v2150_v33, %v1093_v31  ;;  %v840_v41 = vmax.f32 %v756_v36, 0.0  ;;  %v2470_v36 = vld [vmem:[%s2736_s4 + $0x1] ss:$0 sm:$0xff] }
 0x2a6   :  { %v1429_v34 = vpop.f32.mrf.mxu3 }
 0x2a7   :  { %v1430_v35 = vadd.f32 %v2276_v53, %v1429_v34  ;;  %v1205_v45 = vmax.f32 %v1094_v37, 0.0 }
 0x2a9   :  { %1569 = vst.msk [vmem:[%s2739_s7 + $0x70] sm:$0xff] %vm1554_vm1, %v1430_v35 }
 0x2aa   :  { %v757_v32 = vpop.f32.mrf.mxu1 }
 0x2ab   :  { %v758_v38 = vadd.f32 %v2340_v9, %v757_v32 }
 0x2ac   :  { %v1095_v40 = vpop.f32.mrf.mxu2 }
 0x2ad   :  { %v841_v42 = vmax.f32 %v758_v38, 0.0  ;;  %v1096_v43 = vadd.f32 %v2150_v33, %v1095_v40 }
 0x2ae   :  { %v1431_v44 = vpop.f32.mrf.mxu3 }
 0x2af   :  { %v879_v46 = vpack.c.bf16 %v841_v42, %v840_v41  ;;  %v1206_v47 = vmax.f32 %v1096_v43, 0.0  ;;  %v1432_v48 = vadd.f32 %v2276_v53, %v1431_v44 }
 0x2b1   :  { %v1253_v49 = vpack.c.bf16 %v1206_v47, %v1205_v45  ;;  %1570 = vst.msk [vmem:[%s2739_s7 + $0x78] sm:$0xff] %vm1554_vm1, %v1432_v48  ;;  %1741 = vmatmul.msk.bf16.gmra.mxu2 %vm143_vm0, %v879_v46 }
 0x2b2   :  { %v760_v50 = vpop.f32.mrf.mxu1 }
 0x2b3   :  { %1772 = vmatmul.msk.bf16.gmra.mxu3 %vm143_vm0, %v1253_v49  ;;  %v761_v55 = vadd.f32 %v2340_v9, %v760_v50 }
 0x2b4   :  { %v1098_v51 = vpop.f32.mrf.mxu2 }
 0x2b5   :  { %v1099_v57 = vadd.f32 %v2150_v33, %v1098_v51  ;;  %v842_v39 = vmax.f32 %v761_v55, 0.0 }
 0x2b6   :  { %v1434_v52 = vpop.f32.mrf.mxu3 }
 0x2b7   :  { %v1435_v54 = vadd.f32 %v2276_v53, %v1434_v52  ;;  %v1207_v0 = vmax.f32 %v1099_v57, 0.0 }
 0x2b9   :  { %1571 = vst.msk [vmem:[%s2739_s7 + $0x80] sm:$0xff] %vm1554_vm1, %v1435_v54 }
 0x2ba   :  { %v762_v56 = vpop.f32.mrf.mxu1 }
 0x2bb   :  { %v763_v58 = vadd.f32 %v2340_v9, %v762_v56 }
 0x2bc   :  { %v1100_v59 = vpop.f32.mrf.mxu2 }
 0x2bd   :  { %v843_v60 = vmax.f32 %v763_v58, 0.0  ;;  %v1101_v62 = vadd.f32 %v2150_v33, %v1100_v59 }
 0x2be   :  { %v1436_v63 = vpop.f32.mrf.mxu3 }
 0x2bf   :  { %v880_v1 = vpack.c.bf16 %v843_v60, %v842_v39  ;;  %v1208_v2 = vmax.f32 %v1101_v62, 0.0  ;;  %v1437_v61 = vadd.f32 %v2276_v53, %v1436_v63 }
 0x2c1   :  { %v1254_v3 = vpack.c.bf16 %v1208_v2, %v1207_v0  ;;  %1572 = vst.msk [vmem:[%s2739_s7 + $0x88] sm:$0xff] %vm1554_vm1, %v1437_v61  ;;  %1742 = vmatmul.msk.bf16.gmra.mxu2 %vm143_vm0, %v880_v1 }
 0x2c2   :  { %v765_v4 = vpop.f32.mrf.mxu1 }
 0x2c3   :  { %1773 = vmatmul.msk.bf16.gmra.mxu3 %vm143_vm0, %v1254_v3  ;;  %v766_v8 = vadd.f32 %v2340_v9, %v765_v4 }
 0x2c4   :  { %v1103_v5 = vpop.f32.mrf.mxu2 }
 0x2c5   :  { %v1104_v11 = vadd.f32 %v2150_v33, %v1103_v5  ;;  %v844_v14 = vmax.f32 %v766_v8, 0.0 }
 0x2c6   :  { %v1439_v6 = vpop.f32.mrf.mxu3 }
 0x2c7   :  { %v1440_v7 = vadd.f32 %v2276_v53, %v1439_v6  ;;  %v1209_v18 = vmax.f32 %v1104_v11, 0.0 }
 0x2c9   :  { %1573 = vst.msk [vmem:[%s2739_s7 + $0x90] sm:$0xff] %vm1554_vm1, %v1440_v7 }
 0x2ca   :  { %v767_v10 = vpop.f32.mrf.mxu1 }
 0x2cb   :  { %v768_v12 = vadd.f32 %v2340_v9, %v767_v10 }
 0x2cc   :  { %v1105_v13 = vpop.f32.mrf.mxu2 }
 0x2cd   :  { %v845_v15 = vmax.f32 %v768_v12, 0.0  ;;  %v1106_v16 = vadd.f32 %v2150_v33, %v1105_v13 }
 0x2ce   :  { %v1441_v17 = vpop.f32.mrf.mxu3 }
 0x2cf   :  { %v881_v19 = vpack.c.bf16 %v845_v15, %v844_v14  ;;  %v1210_v20 = vmax.f32 %v1106_v16, 0.0  ;;  %v1442_v21 = vadd.f32 %v2276_v53, %v1441_v17 }
 0x2d1   :  { %v1255_v22 = vpack.c.bf16 %v1210_v20, %v1209_v18  ;;  %1574 = vst.msk [vmem:[%s2739_s7 + $0x98] sm:$0xff] %vm1554_vm1, %v1442_v21  ;;  %1743 = vmatmul.msk.bf16.gmra.mxu2 %vm143_vm0, %v881_v19 }
 0x2d2   :  { %v770_v23 = vpop.f32.mrf.mxu1 }
 0x2d3   :  { %1774 = vmatmul.msk.bf16.gmra.mxu3 %vm143_vm0, %v1255_v22  ;;  %v771_v27 = vadd.f32 %v2340_v9, %v770_v23 }
 0x2d4   :  { %v1108_v24 = vpop.f32.mrf.mxu2 }
 0x2d5   :  { %v1109_v29 = vadd.f32 %v2150_v33, %v1108_v24  ;;  %v846_v34 = vmax.f32 %v771_v27, 0.0 }
 0x2d6   :  { %v1444_v25 = vpop.f32.mrf.mxu3 }
 0x2d7   :  { %v1445_v26 = vadd.f32 %v2276_v53, %v1444_v25  ;;  %v1211_v38 = vmax.f32 %v1109_v29, 0.0 }
 0x2d9   :  { %1575 = vst.msk [vmem:[%s2739_s7 + $0xa0] sm:$0xff] %vm1554_vm1, %v1445_v26 }
 0x2da   :  { %v772_v28 = vpop.f32.mrf.mxu1 }
 0x2db   :  { %v773_v30 = vadd.f32 %v2340_v9, %v772_v28 }
 0x2dc   :  { %v1110_v31 = vpop.f32.mrf.mxu2 }
 0x2dd   :  { %v847_v35 = vmax.f32 %v773_v30, 0.0  ;;  %v1111_v32 = vadd.f32 %v2470_v36, %v1110_v31 }
 0x2de   :  { %v1446_v37 = vpop.f32.mrf.mxu3 }
 0x2df   :  { %v882_v40 = vpack.c.bf16 %v847_v35, %v846_v34  ;;  %v1212_v41 = vmax.f32 %v1111_v32, 0.0  ;;  %v1447_v42 = vadd.f32 %v2276_v53, %v1446_v37 }
 0x2e1   :  { %v1256_v43 = vpack.c.bf16 %v1212_v41, %v1211_v38  ;;  %1576 = vst.msk [vmem:[%s2739_s7 + $0xa8] sm:$0xff] %vm1554_vm1, %v1447_v42  ;;  %1744 = vmatmul.msk.bf16.gmra.mxu2 %vm143_vm0, %v882_v40 }
 0x2e2   :  { %v775_v33 = vpop.f32.mrf.mxu1 }
 0x2e3   :  { %1775 = vmatmul.msk.bf16.gmra.mxu3 %vm143_vm0, %v1256_v43  ;;  %v776_v47 = vadd.f32 %v2340_v9, %v775_v33 }
 0x2e4   :  { %v1113_v44 = vpop.f32.mrf.mxu2 }
 0x2e5   :  { %v1114_v49 = vadd.f32 %v2470_v36, %v1113_v44  ;;  %v848_v52 = vmax.f32 %v776_v47, 0.0 }
 0x2e6   :  { %v1449_v45 = vpop.f32.mrf.mxu3 }
 0x2e7   :  { %v1450_v46 = vadd.f32 %v2276_v53, %v1449_v45  ;;  %v1213_v57 = vmax.f32 %v1114_v49, 0.0 }
 0x2e9   :  { %1577 = vst.msk [vmem:[%s2739_s7 + $0xb0] sm:$0xff] %vm1554_vm1, %v1450_v46 }
 0x2ea   :  { %v777_v48 = vpop.f32.mrf.mxu1 }
 0x2eb   :  { %v778_v50 = vadd.f32 %v2340_v9, %v777_v48 }
 0x2ec   :  { %v1115_v51 = vpop.f32.mrf.mxu2 }
 0x2ed   :  { %v849_v54 = vmax.f32 %v778_v50, 0.0  ;;  %v1116_v55 = vadd.f32 %v2470_v36, %v1115_v51 }
 0x2ee   :  { %v1451_v56 = vpop.f32.mrf.mxu3 }
 0x2ef   :  { %v883_v58 = vpack.c.bf16 %v849_v54, %v848_v52  ;;  %v1214_v59 = vmax.f32 %v1116_v55, 0.0  ;;  %v1452_v39 = vadd.f32 %v2276_v53, %v1451_v56 }
 0x2f1   :  { %v1257_v60 = vpack.c.bf16 %v1214_v59, %v1213_v57  ;;  %1578 = vst.msk [vmem:[%s2739_s7 + $0xb8] sm:$0xff] %vm1554_vm1, %v1452_v39  ;;  %1745 = vmatmul.msk.bf16.gmra.mxu2 %vm143_vm0, %v883_v58 }
 0x2f2   :  { %v780_v62 = vpop.f32.mrf.mxu1 }
 0x2f3   :  { %1776 = vmatmul.msk.bf16.gmra.mxu3 %vm143_vm0, %v1257_v60  ;;  %v781_v2 = vadd.f32 %v2340_v9, %v780_v62 }
 0x2f4   :  { %v1118_v63 = vpop.f32.mrf.mxu2 }
 0x2f5   :  { %v1119_v3 = vadd.f32 %v2470_v36, %v1118_v63  ;;  %v850_v6 = vmax.f32 %v781_v2, 0.0 }
 0x2f6   :  { %v1454_v0 = vpop.f32.mrf.mxu3 }
 0x2f7   :  { %v1455_v1 = vadd.f32 %v2276_v53, %v1454_v0  ;;  %v1215_v11 = vmax.f32 %v1119_v3, 0.0 }
 0x2f9   :  { %1579 = vst.msk [vmem:[%s2739_s7 + $0xc0] sm:$0xff] %vm1554_vm1, %v1455_v1 }
 0x2fa   :  { %v782_v61 = vpop.f32.mrf.mxu1 }
 0x2fb   :  { %v783_v4 = vadd.f32 %v2340_v9, %v782_v61 }
 0x2fc   :  { %v1120_v5 = vpop.f32.mrf.mxu2 }
 0x2fd   :  { %v851_v7 = vmax.f32 %v783_v4, 0.0  ;;  %v1121_v8 = vadd.f32 %v2470_v36, %v1120_v5 }
 0x2fe   :  { %v1456_v10 = vpop.f32.mrf.mxu3 }
 0x2ff   :  { %v884_v12 = vpack.c.bf16 %v851_v7, %v850_v6  ;;  %v1216_v13 = vmax.f32 %v1121_v8, 0.0  ;;  %v1457_v14 = vadd.f32 %v2276_v53, %v1456_v10 }
 0x301   :  { %v1258_v15 = vpack.c.bf16 %v1216_v13, %v1215_v11  ;;  %1580 = vst.msk [vmem:[%s2739_s7 + $0xc8] sm:$0xff] %vm1554_vm1, %v1457_v14  ;;  %1746 = vmatmul.msk.bf16.gmra.mxu2 %vm143_vm0, %v884_v12 }
 0x302   :  { %v785_v16 = vpop.f32.mrf.mxu1 }
 0x303   :  { %1777 = vmatmul.msk.bf16.gmra.mxu3 %vm143_vm0, %v1258_v15  ;;  %v786_v20 = vadd.f32 %v2340_v9, %v785_v16 }
 0x304   :  { %v1123_v17 = vpop.f32.mrf.mxu2 }
 0x305   :  { %v1124_v22 = vadd.f32 %v2470_v36, %v1123_v17  ;;  %v852_v25 = vmax.f32 %v786_v20, 0.0 }
 0x306   :  { %v1459_v18 = vpop.f32.mrf.mxu3 }
 0x307   :  { %v1460_v19 = vadd.f32 %v2276_v53, %v1459_v18  ;;  %v1217_v29 = vmax.f32 %v1124_v22, 0.0 }
 0x309   :  { %1581 = vst.msk [vmem:[%s2739_s7 + $0xd0] sm:$0xff] %vm1554_vm1, %v1460_v19 }
 0x30a   :  { %v787_v21 = vpop.f32.mrf.mxu1 }
 0x30b   :  { %v788_v23 = vadd.f32 %v2340_v9, %v787_v21 }
 0x30c   :  { %v1125_v24 = vpop.f32.mrf.mxu2 }
 0x30d   :  { %v853_v26 = vmax.f32 %v788_v23, 0.0  ;;  %v1126_v27 = vadd.f32 %v2470_v36, %v1125_v24 }
 0x30e   :  { %v1461_v28 = vpop.f32.mrf.mxu3 }
 0x30f   :  { %v885_v30 = vpack.c.bf16 %v853_v26, %v852_v25  ;;  %v1218_v31 = vmax.f32 %v1126_v27, 0.0  ;;  %v1462_v34 = vadd.f32 %v2276_v53, %v1461_v28 }
 0x311   :  { %v1259_v35 = vpack.c.bf16 %v1218_v31, %v1217_v29  ;;  %1582 = vst.msk [vmem:[%s2739_s7 + $0xd8] sm:$0xff] %vm1554_vm1, %v1462_v34  ;;  %1747 = vmatmul.msk.bf16.gmra.mxu2 %vm143_vm0, %v885_v30 }
 0x313   :  { %1778 = vmatmul.msk.bf16.gmra.mxu3 %vm143_vm0, %v1259_v35 }
 0x314   :  { %v1128_v9 = vpop.f32.mrf.mxu2 }
 0x315   :  { %v1129_v38 = vadd.f32 %v2470_v36, %v1128_v9 }
 0x316   :  { %v1464_v32 = vpop.f32.mrf.mxu3 }
 0x317   :  { %v1465_v37 = vadd.f32 %v2276_v53, %v1464_v32  ;;  %v1219_v43 = vmax.f32 %v1129_v38, 0.0 }
 0x319   :  { %1583 = vst.msk [vmem:[%s2739_s7 + $0xe0] sm:$0xff] %vm1554_vm1, %v1465_v37 }
 0x31c   :  { %v1130_v40 = vpop.f32.mrf.mxu2 }
 0x31d   :  { %v1131_v41 = vadd.f32 %v2470_v36, %v1130_v40 }
 0x31e   :  { %v1466_v42 = vpop.f32.mrf.mxu3 }
 0x31f   :  { %v1220_v33 = vmax.f32 %v1131_v41, 0.0  ;;  %v1467_v44 = vadd.f32 %v2276_v53, %v1466_v42 }
 0x321   :  { %v1260_v45 = vpack.c.bf16 %v1220_v33, %v1219_v43  ;;  %1584 = vst.msk [vmem:[%s2739_s7 + $0xe8] sm:$0xff] %vm1554_vm1, %v1467_v44 }
 0x323   :  { %1779 = vmatmul.msk.bf16.gmra.mxu3 %vm143_vm0, %v1260_v45 }
 0x324   :  { %v1133_v46 = vpop.f32.mrf.mxu2 }
 0x325   :  { %v1134_v49 = vadd.f32 %v2470_v36, %v1133_v46 }
 0x326   :  { %v1469_v47 = vpop.f32.mrf.mxu3 }
 0x327   :  { %v1470_v48 = vadd.f32 %v2276_v53, %v1469_v47  ;;  %v1221_v54 = vmax.f32 %v1134_v49, 0.0 }
 0x329   :  { %1585 = vst.msk [vmem:[%s2739_s7 + $0xf0] sm:$0xff] %vm1554_vm1, %v1470_v48 }
 0x32c   :  { %v1135_v50 = vpop.f32.mrf.mxu2 }
 0x32d   :  { %v1136_v51 = vadd.f32 %v2470_v36, %v1135_v50 }
 0x32e   :  { %v1471_v52 = vpop.f32.mrf.mxu3 }
 0x32f   :  { %v1222_v55 = vmax.f32 %v1136_v51, 0.0  ;;  %v1472_v56 = vadd.f32 %v2276_v53, %v1471_v52 }
 0x331   :  { %v1261_v57 = vpack.c.bf16 %v1222_v55, %v1221_v54  ;;  %1586 = vst.msk [vmem:[%s2739_s7 + $0xf8] sm:$0xff] %vm1554_vm1, %v1472_v56 }
 0x333   :  { %1780 = vmatmul.msk.bf16.gmra.mxu3 %vm143_vm0, %v1261_v57 }
 0x334   :  { %v1138_v58 = vpop.f32.mrf.mxu2 }
 0x335   :  { %v1139_v60 = vadd.f32 %v2470_v36, %v1138_v58 }
 0x336   :  { %v1474_v59 = vpop.f32.mrf.mxu3 }
 0x337   :  { %v1475_v39 = vadd.f32 %v2276_v53, %v1474_v59  ;;  %v1223_v1 = vmax.f32 %v1139_v60, 0.0 }
 0x339   :  { %1587 = vst.msk [vmem:[%s2739_s7 + $0x100] sm:$0xff] %vm1554_vm1, %v1475_v39 }
 0x33c   :  { %v1140_v62 = vpop.f32.mrf.mxu2 }
 0x33d   :  { %v1141_v63 = vadd.f32 %v2470_v36, %v1140_v62 }
 0x33e   :  { %v1476_v0 = vpop.f32.mrf.mxu3 }
 0x33f   :  { %v1224_v2 = vmax.f32 %v1141_v63, 0.0  ;;  %v1477_v61 = vadd.f32 %v2276_v53, %v1476_v0 }
 0x341   :  { %v1262_v3 = vpack.c.bf16 %v1224_v2, %v1223_v1  ;;  %1588 = vst.msk [vmem:[%s2739_s7 + $0x108] sm:$0xff] %vm1554_vm1, %v1477_v61 }
 0x343   :  { %1781 = vmatmul.msk.bf16.gmra.mxu3 %vm143_vm0, %v1262_v3 }
 0x344   :  { %v1143_v4 = vpop.f32.mrf.mxu2 }
 0x345   :  { %v1144_v7 = vadd.f32 %v2470_v36, %v1143_v4 }
 0x346   :  { %v1479_v5 = vpop.f32.mrf.mxu3 }
 0x347   :  { %v1480_v6 = vadd.f32 %v2276_v53, %v1479_v5  ;;  %v1225_v12 = vmax.f32 %v1144_v7, 0.0 }
 0x349   :  { %1589 = vst.msk [vmem:[%s2739_s7 + $0x110] sm:$0xff] %vm1554_vm1, %v1480_v6 }
 0x34c   :  { %v1145_v8 = vpop.f32.mrf.mxu2 }
 0x34d   :  { %v1146_v10 = vadd.f32 %v2470_v36, %v1145_v8 }
 0x34e   :  { %v1481_v11 = vpop.f32.mrf.mxu3 }
 0x34f   :  { %v1226_v13 = vmax.f32 %v1146_v10, 0.0  ;;  %v1482_v14 = vadd.f32 %v2276_v53, %v1481_v11 }
 0x351   :  { %v1263_v15 = vpack.c.bf16 %v1226_v13, %v1225_v12  ;;  %1590 = vst.msk [vmem:[%s2739_s7 + $0x118] sm:$0xff] %vm1554_vm1, %v1482_v14 }
 0x353   :  { %1782 = vmatmul.msk.bf16.gmra.mxu3 %vm143_vm0, %v1263_v15 }
 0x354   :  { %v1148_v16 = vpop.f32.mrf.mxu2 }
 0x355   :  { %v1149_v19 = vadd.f32 %v2470_v36, %v1148_v16 }
 0x356   :  { %v1484_v17 = vpop.f32.mrf.mxu3 }
 0x357   :  { %v1485_v18 = vadd.f32 %v2276_v53, %v1484_v17  ;;  %v1227_v23 = vmax.f32 %v1149_v19, 0.0 }
 0x359   :  { %1591 = vst.msk [vmem:[%s2739_s7 + $0x120] sm:$0xff] %vm1554_vm1, %v1485_v18 }
 0x35c   :  { %v1150_v20 = vpop.f32.mrf.mxu2 }
 0x35d   :  { %v1151_v21 = vadd.f32 %v2470_v36, %v1150_v20 }
 0x35e   :  { %v1486_v22 = vpop.f32.mrf.mxu3 }
 0x35f   :  { %v1228_v24 = vmax.f32 %v1151_v21, 0.0  ;;  %v1487_v25 = vadd.f32 %v2276_v53, %v1486_v22 }
 0x361   :  { %v1264_v26 = vpack.c.bf16 %v1228_v24, %v1227_v23  ;;  %1592 = vst.msk [vmem:[%s2739_s7 + $0x128] sm:$0xff] %vm1554_vm1, %v1487_v25 }
 0x363   :  { %1783 = vmatmul.msk.bf16.gmra.mxu3 %vm143_vm0, %v1264_v26 }
 0x364   :  { %v1153_v27 = vpop.f32.mrf.mxu2 }
 0x365   :  { %v1154_v30 = vadd.f32 %v2470_v36, %v1153_v27 }
 0x366   :  { %v1489_v28 = vpop.f32.mrf.mxu3 }
 0x367   :  { %v1490_v29 = vadd.f32 %v2276_v53, %v1489_v28  ;;  %v1229_v9 = vmax.f32 %v1154_v30, 0.0 }
 0x369   :  { %1593 = vst.msk [vmem:[%s2739_s7 + $0x130] sm:$0xff] %vm1554_vm1, %v1490_v29 }
 0x36c   :  { %v1155_v31 = vpop.f32.mrf.mxu2 }
 0x36d   :  { %v1156_v34 = vadd.f32 %v2470_v36, %v1155_v31 }
 0x36e   :  { %v1491_v35 = vpop.f32.mrf.mxu3 }
 0x36f   :  { %v1230_v32 = vmax.f32 %v1156_v34, 0.0  ;;  %v1492_v37 = vadd.f32 %v2276_v53, %v1491_v35  ;;  %v1803_v35 = vld [vmem:[%s2738_s6] ss:$0 sm:$0xff] }
 0x371   :  { %v1265_v38 = vpack.c.bf16 %v1230_v32, %v1229_v9  ;;  %1594 = vst.msk [vmem:[%s2739_s7 + $0x138] sm:$0xff] %vm1554_vm1, %v1492_v37 }
 0x373   :  { %1784 = vmatmul.msk.bf16.gmra.mxu3 %vm143_vm0, %v1265_v38 }
 0x374   :  { %v1158_v40 = vpop.f32.mrf.mxu2 }
 0x375   :  { %v1159_v43 = vadd.f32 %v2470_v36, %v1158_v40 }
 0x376   :  { %v1494_v41 = vpop.f32.mrf.mxu3 }
 0x377   :  { %v1495_v42 = vadd.f32 %v2276_v53, %v1494_v41  ;;  %v1231_v46 = vmax.f32 %v1159_v43, 0.0 }
 0x379   :  { %1595 = vst.msk [vmem:[%s2739_s7 + $0x140] sm:$0xff] %vm1554_vm1, %v1495_v42 }
 0x37c   :  { %v1160_v33 = vpop.f32.mrf.mxu2 }
 0x37d   :  { %v1161_v44 = vadd.f32 %v2470_v36, %v1160_v33 }
 0x37e   :  { %v1496_v45 = vpop.f32.mrf.mxu3 }
 0x37f   :  { %v1232_v47 = vmax.f32 %v1161_v44, 0.0  ;;  %v1497_v48 = vadd.f32 %v2276_v53, %v1496_v45 }
 0x381   :  { %v1266_v49 = vpack.c.bf16 %v1232_v47, %v1231_v46  ;;  %1596 = vst.msk [vmem:[%s2739_s7 + $0x148] sm:$0xff] %vm1554_vm1, %v1497_v48 }
 0x383   :  { %1785 = vmatmul.msk.bf16.gmra.mxu3 %vm143_vm0, %v1266_v49 }
 0x384   :  { %v1163_v50 = vpop.f32.mrf.mxu2 }
 0x385   :  { %v1164_v54 = vadd.f32 %v2470_v36, %v1163_v50 }
 0x386   :  { %v1499_v51 = vpop.f32.mrf.mxu3 }
 0x387   :  { %v1500_v52 = vadd.f32 %v2276_v53, %v1499_v51  ;;  %v1233_v58 = vmax.f32 %v1164_v54, 0.0 }
 0x389   :  { %1597 = vst.msk [vmem:[%s2739_s7 + $0x150] sm:$0xff] %vm1554_vm1, %v1500_v52 }
 0x38c   :  { %v1165_v55 = vpop.f32.mrf.mxu2 }
 0x38d   :  { %v1166_v56 = vadd.f32 %v2470_v36, %v1165_v55 }
 0x38e   :  { %v1501_v57 = vpop.f32.mrf.mxu3 }
 0x38f   :  { %v1234_v59 = vmax.f32 %v1166_v56, 0.0  ;;  %v1502_v39 = vadd.f32 %v2276_v53, %v1501_v57 }
 0x391   :  { %v1267_v60 = vpack.c.bf16 %v1234_v59, %v1233_v58  ;;  %1598 = vst.msk [vmem:[%s2739_s7 + $0x158] sm:$0xff] %vm1554_vm1, %v1502_v39 }
 0x393   :  { %1786 = vmatmul.msk.bf16.gmra.mxu3 %vm143_vm0, %v1267_v60 }
 0x394   :  { %v1168_v62 = vpop.f32.mrf.mxu2 }
 0x395   :  { %v1169_v1 = vadd.f32 %v2470_v36, %v1168_v62 }
 0x396   :  { %v1504_v63 = vpop.f32.mrf.mxu3 }
 0x397   :  { %v1505_v0 = vadd.f32 %v2276_v53, %v1504_v63  ;;  %v1235_v4 = vmax.f32 %v1169_v1, 0.0 }
 0x399   :  { %1599 = vst.msk [vmem:[%s2739_s7 + $0x160] sm:$0xff] %vm1554_vm1, %v1505_v0 }
 0x39c   :  { %v1170_v2 = vpop.f32.mrf.mxu2 }
 0x39d   :  { %v1171_v61 = vadd.f32 %v2470_v36, %v1170_v2 }
 0x39e   :  { %v1506_v3 = vpop.f32.mrf.mxu3 }
 0x39f   :  { %v1236_v5 = vmax.f32 %v1171_v61, 0.0  ;;  %v1507_v6 = vadd.f32 %v2276_v53, %v1506_v3 }
 0x3a1   :  { %v1268_v7 = vpack.c.bf16 %v1236_v5, %v1235_v4  ;;  %1600 = vst.msk [vmem:[%s2739_s7 + $0x168] sm:$0xff] %vm1554_vm1, %v1507_v6 }
 0x3a3   :  { %1787 = vmatmul.msk.bf16.gmra.mxu3 %vm143_vm0, %v1268_v7 }
 0x3a6   :  { %v1509_v8 = vpop.f32.mrf.mxu3 }
 0x3a7   :  { %v1510_v10 = vadd.f32 %v2276_v53, %v1509_v8 }
 0x3a9   :  { %1601 = vst.msk [vmem:[%s2739_s7 + $0x170] sm:$0xff] %vm1554_vm1, %v1510_v10 }
 0x3ae   :  { %v1511_v36 = vpop.f32.mrf.mxu3 }
 0x3af   :  { %v1512_v11 = vadd.f32 %v2276_v53, %v1511_v36 }
 0x3b1   :  { %1602 = vst.msk [vmem:[%s2739_s7 + $0x178] sm:$0xff] %vm1554_vm1, %v1512_v11 }
 0x3b6   :  { %v1514_v12 = vpop.f32.mrf.mxu3 }
 0x3b7   :  { %v1515_v13 = vadd.f32 %v2276_v53, %v1514_v12 }
 0x3b9   :  { %1603 = vst.msk [vmem:[%s2739_s7 + $0x180] sm:$0xff] %vm1554_vm1, %v1515_v13 }
 0x3be   :  { %v1516_v14 = vpop.f32.mrf.mxu3 }
 0x3bf   :  { %v1517_v15 = vadd.f32 %v2276_v53, %v1516_v14 }
 0x3c1   :  { %1604 = vst.msk [vmem:[%s2739_s7 + $0x188] sm:$0xff] %vm1554_vm1, %v1517_v15 }
 0x3c6   :  { %v1519_v16 = vpop.f32.mrf.mxu3 }
 0x3c7   :  { %v1520_v17 = vadd.f32 %v2276_v53, %v1519_v16 }
 0x3c9   :  { %1605 = vst.msk [vmem:[%s2739_s7 + $0x190] sm:$0xff] %vm1554_vm1, %v1520_v17 }
 0x3ce   :  { %v1521_v18 = vpop.f32.mrf.mxu3 }
 0x3cf   :  { %v1522_v19 = vadd.f32 %v2276_v53, %v1521_v18 }
 0x3d1   :  { %1606 = vst.msk [vmem:[%s2739_s7 + $0x198] sm:$0xff] %vm1554_vm1, %v1522_v19 }
 0x3d6   :  { %v1524_v20 = vpop.f32.mrf.mxu3 }
 0x3d7   :  { %v1525_v21 = vadd.f32 %v2276_v53, %v1524_v20 }
 0x3d9   :  { %1607 = vst.msk [vmem:[%s2739_s7 + $0x1a0] sm:$0xff] %vm1554_vm1, %v1525_v21 }
 0x3de   :  { %v1526_v22 = vpop.f32.mrf.mxu3 }
 0x3df   :  { %v1527_v23 = vadd.f32 %v2276_v53, %v1526_v22 }
 0x3e1   :  { %1608 = vst.msk [vmem:[%s2739_s7 + $0x1a8] sm:$0xff] %vm1554_vm1, %v1527_v23 }
 0x3e6   :  { %v1529_v24 = vpop.f32.mrf.mxu3 }
 0x3e7   :  { %v1530_v25 = vadd.f32 %v2276_v53, %v1529_v24 }
 0x3e9   :  { %1609 = vst.msk [vmem:[%s2739_s7 + $0x1b0] sm:$0xff] %vm1554_vm1, %v1530_v25 }
 0x3ee   :  { %v1531_v26 = vpop.f32.mrf.mxu3 }
 0x3ef   :  { %v1532_v27 = vadd.f32 %v2276_v53, %v1531_v26 }
 0x3f1   :  { %1610 = vst.msk [vmem:[%s2739_s7 + $0x1b8] sm:$0xff] %vm1554_vm1, %v1532_v27 }
 0x3f6   :  { %v1534_v28 = vpop.f32.mrf.mxu3 }
 0x3f7   :  { %v1535_v29 = vadd.f32 %v2276_v53, %v1534_v28 }
 0x3f9   :  { %1611 = vst.msk [vmem:[%s2739_s7 + $0x1c0] sm:$0xff] %vm1554_vm1, %v1535_v29 }
 0x3fe   :  { %v1536_v30 = vpop.f32.mrf.mxu3 }
 0x3ff   :  { %v1537_v31 = vadd.f32 %v2276_v53, %v1536_v30 }
 0x401   :  { %1612 = vst.msk [vmem:[%s2739_s7 + $0x1c8] sm:$0xff] %vm1554_vm1, %v1537_v31 }
 0x406   :  { %v1539_v34 = vpop.f32.mrf.mxu3 }
 0x407   :  { %v1540_v9 = vadd.f32 %v1803_v35, %v1539_v34 }
 0x409   :  { %1613 = vst.msk [vmem:[%s2739_s7 + $0x1d0] sm:$0xff] %vm1554_vm1, %v1540_v9 }
 0x40e   :  { %v1541_v32 = vpop.f32.mrf.mxu3 }
 0x40f   :  { %v1542_v37 = vadd.f32 %v1803_v35, %v1541_v32 }
 0x411   :  { %1614 = vst.msk [vmem:[%s2739_s7 + $0x1d8] sm:$0xff] %vm1554_vm1, %v1542_v37 }
 0x416   :  { %v1544_v53 = vpop.f32.mrf.mxu3 }
 0x417   :  { %v1545_v38 = vadd.f32 %v1803_v35, %v1544_v53 }
 0x419   :  { %1615 = vst.msk [vmem:[%s2739_s7 + $0x1e0] sm:$0xff] %vm1554_vm1, %v1545_v38 }
 0x41e   :  { %v1546_v40 = vpop.f32.mrf.mxu3 }
 0x41f   :  { %v1547_v41 = vadd.f32 %v1803_v35, %v1546_v40 }
 0x421   :  { %1616 = vst.msk [vmem:[%s2739_s7 + $0x1e8] sm:$0xff] %vm1554_vm1, %v1547_v41 }
 0x426   :  { %v1549_v42 = vpop.f32.mrf.mxu3 }
 0x427   :  { %v1550_v43 = vadd.f32 %v1803_v35, %v1549_v42 }
 0x429   :  { %1617 = vst.msk [vmem:[%s2739_s7 + $0x1f0] sm:$0xff] %vm1554_vm1, %v1550_v43 }
 0x42e   :  { %v1551_v33 = vpop.f32.mrf.mxu3 }
 0x42f   :  { %v1552_v44 = vadd.f32 %v1803_v35, %v1551_v33 }
 0x431   :  { %1618 = vst.msk [vmem:[%s2739_s7 + $0x1f8] sm:$0xff] %vm1554_vm1, %v1552_v44 }

</bundles_post_ra>
